<compile_context>
chip_gen: v7x
topology: tpu7x:2x2x1
jax: 0.10.0
libtpu: 0.0.40
codegen_flags: <defaults>
</compile_context>

<pallas_src>
import jax
import jax.numpy as jnp
from jax.experimental import pallas as pl
from jax.experimental.pallas import tpu as pltpu

EPS = 1e-5


def _sfn_kernel(xT_ref, p1_ref, w2_ref, p2_ref, b3_ref, out_ref):
    n = xT_ref.shape[-1]
    inv_n = 1.0 / n

    xT = xT_ref[...]                                   # (3, N)  N on lanes
    p1 = p1_ref[...]                                   # (L, 5) = [w1 | g1 | be1]

    # ---- layer 1: K=3 contraction as three VPU broadcast FMAs (no MXU) ----
    # Linear bias omitted: it cancels exactly through training-mode BN.
    y = (p1[:, 0:1] * xT[0:1, :]
         + p1[:, 1:2] * xT[1:2, :]
         + p1[:, 2:3] * xT[2:3, :])                    # (L, N)

    # ---- batchnorm1 (training, biased var), one-pass moments ---------------
    s1 = jnp.sum(y, axis=-1, keepdims=True)            # (L, 1)  XLU lane reduce
    s2 = jnp.sum(y * y, axis=-1, keepdims=True)
    mu = s1 * inv_n
    var = s2 * inv_n - mu * mu
    scale = jax.lax.rsqrt(var + EPS) * p1[:, 3:4]      # gamma1
    shift = p1[:, 4:5] - mu * scale                    # beta1 - mu*scale
    y = jnp.sin(y * scale + shift)                     # (L, N)

    # ---- layer 2: the only MXU matmul in the kernel (bias cancels in BN2) --
    y = jnp.dot(w2_ref[...], y,
                preferred_element_type=jnp.float32)    # (L/2, N)

    # ---- batchnorm2, one-pass moments --------------------------------------
    p2 = p2_ref[...]                                   # (L/2, 3) = [g2 | be2 | w3]
    s1 = jnp.sum(y, axis=-1, keepdims=True)            # (L/2, 1)
    s2 = jnp.sum(y * y, axis=-1, keepdims=True)
    mu = s1 * inv_n
    var = s2 * inv_n - mu * mu
    scale = jax.lax.rsqrt(var + EPS) * p2[:, 0:1]
    shift = p2[:, 1:2] - mu * scale
    y = jnp.sin(y * scale + shift)                     # (L/2, N)

    # ---- layer 3: (L/2 -> 1) as VPU mul + sublane reduce; lane-dense store --
    out_ref[...] = (jnp.sum(y * p2[:, 2:3], axis=0, keepdims=True)
                    + b3_ref[0, 0])                    # (1, N)


def streamfunction_forward(x, params):
    """x: (N, 3) float32.  Returns (N, 1) float32, matching the PyTorch module."""
    n, f = x.shape
    assert f == 3
    L = params["w1"].shape[0]
    Lh = L // 2

    # Layout plumbing; for large N generate points in (3, N) upstream instead.
    xT = x.T                                           # (3, N): lane-dense batch

    # Pack the tiny per-feature parameters into two slabs + one SMEM scalar.
    p1 = jnp.concatenate([params["w1"], params["g1"], params["be1"]], axis=1)   # (L, 5)
    p2 = jnp.concatenate([params["g2"], params["be2"], params["w3c"]], axis=1)  # (L/2, 3)
    b3 = params["b3"].reshape(1, 1)

    vmem = pl.BlockSpec(memory_space=pltpu.MemorySpace.VMEM)
    smem = pl.BlockSpec(memory_space=pltpu.MemorySpace.SMEM)

    # Advisory cost hint: layer1 FMAs + 2x BN/sin + middle matmul + layer3.
    flops = n * (6 * L + 10 * L + 2 * L * Lh + 10 * Lh + 2 * Lh)
    bytes_accessed = 4 * (3 * n + n + L * 5 + Lh * L + Lh * 3 + 1)
    cost = pl.CostEstimate(flops=flops,
                           transcendentals=n * (L + Lh),
                           bytes_accessed=bytes_accessed)

    out_t = pl.pallas_call(
        _sfn_kernel,
        out_shape=jax.ShapeDtypeStruct((1, n), jnp.float32),
        in_specs=[vmem, vmem, vmem, vmem, smem],
        out_specs=vmem,
        cost_estimate=cost,
    )(xT, p1, params["w2"], p2, b3)

    return out_t.reshape(n, 1)                         # wrapper-side layout plumbing


def init_params(key, L):
    """Synthetic parameters matching initialize_weights(): weights ~ N(0, 5^2);
    Linear biases small; BatchNorm gamma=1 / beta=0 (PyTorch defaults).
    Per-feature vectors are stored as columns so they broadcast along lanes."""
    Lh = L // 2
    k1, k2, k3, kb1, kb2, kb3 = jax.random.split(key, 6)
    w1 = 5.0 * jax.random.normal(k1, (L, 3), jnp.float32)    # torch layout (out, in)
    w2 = 5.0 * jax.random.normal(k2, (Lh, L), jnp.float32)
    w3 = 5.0 * jax.random.normal(k3, (1, Lh), jnp.float32)
    b1 = 0.1 * jax.random.normal(kb1, (L,), jnp.float32)
    b2 = 0.1 * jax.random.normal(kb2, (Lh,), jnp.float32)
    b3 = 0.1 * jax.random.normal(kb3, (1,), jnp.float32)
    return {
        "w1":  w1,                                    # (L, 3)
        "b1":  b1.reshape(L, 1),                      # kept for the reference only
        "g1":  jnp.ones((L, 1), jnp.float32),
        "be1": jnp.zeros((L, 1), jnp.float32),
        "w2":  w2,                                    # (L/2, L)
        "b2":  b2.reshape(Lh, 1),                     # kept for the reference only
        "g2":  jnp.ones((Lh, 1), jnp.float32),
        "be2": jnp.zeros((Lh, 1), jnp.float32),
        "w3c": jnp.asarray(w3.T),                     # (L/2, 1) column
        "b3":  b3.reshape(1, 1),
    }


def reference_forward(x, p):
    """Pure-JAX reference reproducing the PyTorch forward (training-mode BN),
    computed in the natural (N, features) layout, biases included."""
    def bn(y, g_col, b_col):
        mu = jnp.mean(y, axis=0, keepdims=True)
        var = jnp.mean((y - mu) ** 2, axis=0, keepdims=True)
        return (y - mu) / jnp.sqrt(var + EPS) * g_col.T + b_col.T
    y = x @ p["w1"].T + p["b1"].T
    y = jnp.sin(bn(y, p["g1"], p["be1"]))
    y = y @ p["w2"].T + p["b2"].T
    y = jnp.sin(bn(y, p["g2"], p["be2"]))
    return y @ p["w3c"] + p["b3"]                      # (N, 1)


if __name__ == "__main__":
    L = 32        # hidden width (layer2 width = 16)
    N = 256       # batch of (x, y, t) collocation points; multiple of 128 so
                  # the lane-dense activations carry no padded lanes.

    key = jax.random.PRNGKey(0)
    kx, kp = jax.random.split(key)
    x = jax.random.normal(kx, (N, 3), jnp.float32)
    params = init_params(kp, L)

    out = jax.block_until_ready(streamfunction_forward(x, params))

    ref = reference_forward(x, params)
    assert out.shape == (N, 1)
    assert jnp.allclose(out, ref, atol=1e-3, rtol=1e-3), "mismatch vs pure-JAX reference"

    print("KERNEL_OK")
</pallas_src>

<mosaic_0001>
module attributes {stable_mosaic.version = 11 : i64} {
  func.func @_sfn_kernel(%arg0: memref<3x256xf32, #tpu.memory_space<vmem>>, %arg1: memref<32x5xf32, #tpu.memory_space<vmem>>, %arg2: memref<16x32xf32, #tpu.memory_space<vmem>>, %arg3: memref<16x3xf32, #tpu.memory_space<vmem>>, %arg4: memref<1x1xf32, #tpu.memory_space<smem>>, %arg5: memref<1x256xf32, #tpu.memory_space<vmem>>) attributes {dimension_semantics = [], scalar_prefetch = 0 : i64, scratch_operands = 0 : i64, tpu.core_type = #tpu.core_type<tc>} {
    %c0 = arith.constant 0 : index
    %c0_0 = arith.constant 0 : index
    %0 = vector.load %arg0[%c0, %c0_0] : memref<3x256xf32, #tpu.memory_space<vmem>>, vector<3x256xf32>
    %c0_1 = arith.constant 0 : index
    %c0_2 = arith.constant 0 : index
    %1 = vector.load %arg1[%c0_1, %c0_2] : memref<32x5xf32, #tpu.memory_space<vmem>>, vector<32x5xf32>
    %2 = vector.extract_strided_slice %1 {offsets = [0, 0], sizes = [32, 1], strides = [1, 1]} : vector<32x5xf32> to vector<32x1xf32>
    %3 = vector.extract_strided_slice %0 {offsets = [0, 0], sizes = [1, 256], strides = [1, 1]} : vector<3x256xf32> to vector<1x256xf32>
    %4 = vector.broadcast %2 : vector<32x1xf32> to vector<32x256xf32>
    %5 = vector.broadcast %3 : vector<1x256xf32> to vector<32x256xf32>
    %6 = arith.mulf %4, %5 : vector<32x256xf32>
    %7 = vector.extract_strided_slice %1 {offsets = [0, 1], sizes = [32, 1], strides = [1, 1]} : vector<32x5xf32> to vector<32x1xf32>
    %8 = vector.extract_strided_slice %0 {offsets = [1, 0], sizes = [1, 256], strides = [1, 1]} : vector<3x256xf32> to vector<1x256xf32>
    %9 = vector.broadcast %7 : vector<32x1xf32> to vector<32x256xf32>
    %10 = vector.broadcast %8 : vector<1x256xf32> to vector<32x256xf32>
    %11 = arith.mulf %9, %10 : vector<32x256xf32>
    %12 = arith.addf %6, %11 : vector<32x256xf32>
    %13 = vector.extract_strided_slice %1 {offsets = [0, 2], sizes = [32, 1], strides = [1, 1]} : vector<32x5xf32> to vector<32x1xf32>
    %14 = vector.extract_strided_slice %0 {offsets = [2, 0], sizes = [1, 256], strides = [1, 1]} : vector<3x256xf32> to vector<1x256xf32>
    %15 = vector.broadcast %13 : vector<32x1xf32> to vector<32x256xf32>
    %16 = vector.broadcast %14 : vector<1x256xf32> to vector<32x256xf32>
    %17 = arith.mulf %15, %16 : vector<32x256xf32>
    %18 = arith.addf %12, %17 : vector<32x256xf32>
    %cst = arith.constant dense<0.000000e+00> : vector<32xf32>
    %19 = vector.multi_reduction <add>, %18, %cst [1] : vector<32x256xf32> to vector<32xf32>
    %20 = vector.shape_cast %19 : vector<32xf32> to vector<32x1xf32>
    %21 = arith.mulf %18, %18 : vector<32x256xf32>
    %cst_3 = arith.constant dense<0.000000e+00> : vector<32xf32>
    %22 = vector.multi_reduction <add>, %21, %cst_3 [1] : vector<32x256xf32> to vector<32xf32>
    %23 = vector.shape_cast %22 : vector<32xf32> to vector<32x1xf32>
    %cst_4 = arith.constant 3.906250e-03 : f32
    %24 = vector.broadcast %cst_4 : f32 to vector<32x1xf32>
    %25 = arith.mulf %20, %24 : vector<32x1xf32>
    %cst_5 = arith.constant 3.906250e-03 : f32
    %26 = vector.broadcast %cst_5 : f32 to vector<32x1xf32>
    %27 = arith.mulf %23, %26 : vector<32x1xf32>
    %28 = arith.mulf %25, %25 : vector<32x1xf32>
    %29 = arith.subf %27, %28 : vector<32x1xf32>
    %cst_6 = arith.constant 9.99999974E-6 : f32
    %30 = vector.broadcast %cst_6 : f32 to vector<32x1xf32>
    %31 = arith.addf %29, %30 : vector<32x1xf32>
    %32 = math.rsqrt %31 : vector<32x1xf32>
    %33 = vector.extract_strided_slice %1 {offsets = [0, 3], sizes = [32, 1], strides = [1, 1]} : vector<32x5xf32> to vector<32x1xf32>
    %34 = arith.mulf %32, %33 : vector<32x1xf32>
    %35 = vector.extract_strided_slice %1 {offsets = [0, 4], sizes = [32, 1], strides = [1, 1]} : vector<32x5xf32> to vector<32x1xf32>
    %36 = arith.mulf %25, %34 : vector<32x1xf32>
    %37 = arith.subf %35, %36 : vector<32x1xf32>
    %38 = vector.broadcast %34 : vector<32x1xf32> to vector<32x256xf32>
    %39 = arith.mulf %18, %38 : vector<32x256xf32>
    %40 = vector.broadcast %37 : vector<32x1xf32> to vector<32x256xf32>
    %41 = arith.addf %39, %40 : vector<32x256xf32>
    %42 = math.sin %41 : vector<32x256xf32>
    %c0_7 = arith.constant 0 : index
    %c0_8 = arith.constant 0 : index
    %43 = vector.load %arg2[%c0_7, %c0_8] : memref<16x32xf32, #tpu.memory_space<vmem>>, vector<16x32xf32>
    %cst_9 = arith.constant dense<0.000000e+00> : vector<16x256xf32>
    %44 = tpu.matmul %43, %42, %cst_9 {dimension_numbers = #tpu.dot_dimension_numbers<[1], [0], [0], [1], [0, 0, 1, 1], [], []>} : vector<16x32xf32>, vector<32x256xf32>, vector<16x256xf32> -> vector<16x256xf32>
    %c0_10 = arith.constant 0 : index
    %c0_11 = arith.constant 0 : index
    %45 = vector.load %arg3[%c0_10, %c0_11] : memref<16x3xf32, #tpu.memory_space<vmem>>, vector<16x3xf32>
    %cst_12 = arith.constant dense<0.000000e+00> : vector<16xf32>
    %46 = vector.multi_reduction <add>, %44, %cst_12 [1] : vector<16x256xf32> to vector<16xf32>
    %47 = vector.shape_cast %46 : vector<16xf32> to vector<16x1xf32>
    %48 = arith.mulf %44, %44 : vector<16x256xf32>
    %cst_13 = arith.constant dense<0.000000e+00> : vector<16xf32>
    %49 = vector.multi_reduction <add>, %48, %cst_13 [1] : vector<16x256xf32> to vector<16xf32>
    %50 = vector.shape_cast %49 : vector<16xf32> to vector<16x1xf32>
    %cst_14 = arith.constant 3.906250e-03 : f32
    %51 = vector.broadcast %cst_14 : f32 to vector<16x1xf32>
    %52 = arith.mulf %47, %51 : vector<16x1xf32>
    %cst_15 = arith.constant 3.906250e-03 : f32
    %53 = vector.broadcast %cst_15 : f32 to vector<16x1xf32>
    %54 = arith.mulf %50, %53 : vector<16x1xf32>
    %55 = arith.mulf %52, %52 : vector<16x1xf32>
    %56 = arith.subf %54, %55 : vector<16x1xf32>
    %cst_16 = arith.constant 9.99999974E-6 : f32
    %57 = vector.broadcast %cst_16 : f32 to vector<16x1xf32>
    %58 = arith.addf %56, %57 : vector<16x1xf32>
    %59 = math.rsqrt %58 : vector<16x1xf32>
    %60 = vector.extract_strided_slice %45 {offsets = [0, 0], sizes = [16, 1], strides = [1, 1]} : vector<16x3xf32> to vector<16x1xf32>
    %61 = arith.mulf %59, %60 : vector<16x1xf32>
    %62 = vector.extract_strided_slice %45 {offsets = [0, 1], sizes = [16, 1], strides = [1, 1]} : vector<16x3xf32> to vector<16x1xf32>
    %63 = arith.mulf %52, %61 : vector<16x1xf32>
    %64 = arith.subf %62, %63 : vector<16x1xf32>
    %65 = vector.broadcast %61 : vector<16x1xf32> to vector<16x256xf32>
    %66 = arith.mulf %44, %65 : vector<16x256xf32>
    %67 = vector.broadcast %64 : vector<16x1xf32> to vector<16x256xf32>
    %68 = arith.addf %66, %67 : vector<16x256xf32>
    %69 = math.sin %68 : vector<16x256xf32>
    %70 = vector.extract_strided_slice %45 {offsets = [0, 2], sizes = [16, 1], strides = [1, 1]} : vector<16x3xf32> to vector<16x1xf32>
    %71 = vector.broadcast %70 : vector<16x1xf32> to vector<16x256xf32>
    %72 = arith.mulf %69, %71 : vector<16x256xf32>
    %cst_17 = arith.constant dense<0.000000e+00> : vector<256xf32>
    %73 = vector.multi_reduction <add>, %72, %cst_17 [0] : vector<16x256xf32> to vector<256xf32>
    %74 = vector.shape_cast %73 : vector<256xf32> to vector<1x256xf32>
    %c0_18 = arith.constant 0 : index
    %c0_19 = arith.constant 0 : index
    %75 = memref.load %arg4[%c0_18, %c0_19] : memref<1x1xf32, #tpu.memory_space<smem>>
    %76 = vector.broadcast %75 : f32 to vector<1x256xf32>
    %77 = arith.addf %74, %76 : vector<1x256xf32>
    %c0_20 = arith.constant 0 : index
    %c0_21 = arith.constant 0 : index
    %78 = vector.load %arg5[%c0_20, %c0_21] : memref<1x256xf32, #tpu.memory_space<vmem>>, vector<1x256xf32>
    tpu.vector_store %arg5[%c0_20, %c0_21], %77 {strides = array<i32>} : memref<1x256xf32, #tpu.memory_space<vmem>>, vector<1x256xf32>,
    return
  }
}

</mosaic_0001>

<bundles_post_ra>
// kernel: tpu_custom_call.1
= control target key start
LH: loop header
LB: loop body
LE: loop exit
PB: predicated region body
PF: predicated region fallthrough
CT: control target
= control target key end

     0   :  { %v3453_v1 = vmov 1   ;;  %v2015_v2 = vmov 0   ;;  %s3446_s0 = inlined_call_operand.vmem [shape: f32[3,256], index: 0, kind: input, shape index: {}]   ;;  %s3447_s1 = inlined_call_operand.vmem [shape: f32[32,5], index: 1, kind: input, shape index: {}]   ;;  %s3448_s2 = inlined_call_operand.vmem [shape: f32[16,32], index: 2, kind: input, shape index: {}]   ;;  %s3449_s3 = inlined_call_operand.vmem [shape: f32[16,3], index: 3, kind: input, shape index: {}]   ;;  %s3450_s4 = inlined_call_operand.<no memory space> [shape: f32[1,1], index: 4, kind: input, shape index: {}]   ;;  %s3451_s5 = inlined_call_operand.hbm [shape: f32[1,256], index: 5, kind: output, shape index: {}]  }
   0x1   :  { %v2062_v0 = vld [vmem:[%s3447_s1] sm:$0xff]  ;;  %1915 = vset.pattern.permute.xlu1 %v3453_v1  ;;  %1914 = vset.pattern.permute.xlu0 %v2015_v2 }
   0x2   :  { %11 = vsyncpa [#allocation4], 0  ;;  %75 = vperm.xlu1 %1915, %v2062_v0   ;;  %29 = vperm.xlu0 %1914, %v2062_v0   ;;  %v2071_v3 = vld [vmem:[%s3447_s1 + $0x8] sm:$0xff]  ;;  %v2078_v4 = vld [vmem:[%s3447_s1 + $0x18] sm:$0xff]  ;;  %v3454_v5 = vmov 2   ;;  %v3452_v7 = vlaneseq  ;;  %s2028_s10 = smov [#allocation3]  }
   0x3   :  { %v2086_v6 = vld [vmem:[%s3447_s1 + $0x10] sm:$0xff]  ;;  %v22_v13 = vld [vmem:[%s3446_s0] sm:$0x77]  ;;  %s2018_s0 = smov 1   ;;  %s1781_s11 = sshll.u32 %s2028_s10, 4  ;;  %s1782_s11 = int_to_ptr.vmem [resolvable:$true] %s1781_s11 }
   0x4   :  { %v2099_v8 = vshrl.u32 %v3452_v7, 7  ;;  %s1990_s12 = scalar_lea.vmem %s1782_s11, 32  ;;  %p1995_p1 = scmp.lt.s32.totalorder %s1782_s11, %s1782_s11 }
   0x5   :  { %p1991_p0 = scmp.ne.s32.totalorder %s1782_s11, %s1990_s12  ;;  %p1996_p2 = scmp.lt.s32.totalorder %s1990_s12, %s1990_s12 }
   0x6   :  { %79 = vperm.xlu1 %1915, %v2071_v3   ;;  %34 = vperm.xlu0 %1914, %v2071_v3   ;;  %3508 = vst [vmem:[#allocation6_spill] sm:$0xff] %v2099_v8  ;;  %v92_v9 = vsub.s32 1, %v2099_v8  ;;  %v96_v10 = vsub.s32 5, %v2099_v8  ;;  %v50_v11 = vsub.s32 0, %v2099_v8  ;;  %v54_v12 = vsub.s32 4, %v2099_v8 }
   0x7   :  { %v142_v14 = vsub.s32 2, %v2099_v8  ;;  %v146_v15 = vsub.s32 6, %v2099_v8  ;;  %v3527_v8 = vmov 2475754826   ;;  %p1997_p3 = por %p1996_p2, %p1995_p1 }
   0x8   :  { %v93_v17 = vrot.slane %v22_v13, %v92_v9  ;;  %v97_v18 = vrot.slane %v22_v13, %v96_v10  ;;  %v51_v20 = vrot.slane %v22_v13, %v50_v11  ;;  %v55_v21 = vrot.slane %v22_v13, %v54_v12 }
   0x9   :  { %v143_v22 = vrot.slane %v22_v13, %v142_v14  ;;  %v147_v23 = vrot.slane %v22_v13, %v146_v15  ;;  %p1998_p4 = pnand %p1997_p3, %p1991_p0 }
   0xa   :  { %1916 = vset.pattern.permute.xlu1 %v3454_v5  ;;  %44 = vperm.xlu0 %1914, %v2078_v4   ;;  %v103_v24 = vrot.slane %v93_v17, %v92_v9  ;;  %v107_v25 = vrot.slane %v97_v18, %v92_v9  ;;  %v61_v26 = vrot.slane %v51_v20, %v50_v11 }
   0xb   :  { %129 = vperm.xlu1 %1916, %v2071_v3   ;;  %v65_v27 = vrot.slane %v55_v21, %v50_v11  ;;  %v153_v30 = vrot.slane %v143_v22, %v142_v14  ;;  %v157_v31 = vrot.slane %v147_v23, %v142_v14 }
   0xe   :  { %1918 = vset.pattern.permute.xlu0 %v3454_v5 }
   0xf   :  { %1917 = vset.pattern.permute.xlu1 %v2015_v2  ;;  %125 = vperm.xlu0 %1918, %v2062_v0  }
  0x10   :  { %39 = vperm.xlu1 %1917, %v2086_v6  }
  0x13   :  { %133 = vperm.xlu0 %1918, %v2086_v6  }
  0x14   :  { %1919 = vset.pattern.permute.xlu1 %v3453_v1 }
  0x15   :  { %83 = vperm.xlu1 %1919, %v2086_v6  }
  0x19   :  { %87 = vperm.xlu1 %1919, %v2078_v4  }
  0x1d   :  { %1920 = vset.pattern.permute.xlu1 %v3454_v5 }
  0x1e   :  { %137 = vperm.xlu1 %1920, %v2078_v4  }
  0x81   :  { %v76_v16 = vpop.permute.xlu1 %75  ;;  %v30_v19 = vpop.permute.xlu0 %29 }
  0x82   :  { %v108_v37 = vmul.f32 %v103_v24, %v76_v16  ;;  %v109_v38 = vmul.f32 %v107_v25, %v76_v16  ;;  %v66_v39 = vmul.f32 %v61_v26, %v30_v19  ;;  %v67_v40 = vmul.f32 %v65_v27, %v30_v19 }
  0x84   :  { %v116_v48 = vadd.f32 %v108_v37, %v66_v39  ;;  %v117_v50 = vadd.f32 %v109_v38, %v67_v40 }
  0x85   :  { %v80_v28 = vpop.permute.xlu1 %79  ;;  %v35_v29 = vpop.permute.xlu0 %34 }
  0x86   :  { %v110_v32 = vmul.f32 %v103_v24, %v80_v28  ;;  %v111_v33 = vmul.f32 %v107_v25, %v80_v28  ;;  %v68_v34 = vmul.f32 %v61_v26, %v35_v29  ;;  %v69_v35 = vmul.f32 %v65_v27, %v35_v29 }
  0x88   :  { %v118_v42 = vadd.f32 %v110_v32, %v68_v34  ;;  %v119_v43 = vadd.f32 %v111_v33, %v69_v35 }
  0x89   :  { %v45_v36 = vpop.permute.xlu0 %44 }
  0x8a   :  { %v130_v41 = vpop.permute.xlu1 %129  ;;  %v72_v21 = vmul.f32 %v61_v26, %v45_v36  ;;  %v73_v22 = vmul.f32 %v65_v27, %v45_v36 }
  0x8b   :  { %v160_v44 = vmul.f32 %v153_v30, %v130_v41  ;;  %v161_v45 = vmul.f32 %v157_v31, %v130_v41  ;;  %v2017_v41 = vmov 3  }
  0x8c   :  { %1921 = vset.pattern.permute.xlu1 %v2017_v41  ;;  %1922 = vset.pattern.permute.xlu0 %v2017_v41 }
  0x8d   :  { %v2110_v46 = vadd.f32 %v160_v44, %v118_v42  ;;  %v2112_v47 = vadd.f32 %v161_v45, %v119_v43 }
  0x8e   :  { %v126_v49 = vpop.permute.xlu0 %125 }
  0x8f   :  { %v158_v51 = vmul.f32 %v153_v30, %v126_v49  ;;  %v159_v52 = vmul.f32 %v157_v31, %v126_v49  ;;  %v40_v53 = vpop.permute.xlu1 %39  ;;  %v177_v54 = vadd.f32 %v2112_v47, %v2110_v46 }
  0x90   :  { %v70_v59 = vmul.f32 %v61_v26, %v40_v53  ;;  %v71_v60 = vmul.f32 %v65_v27, %v40_v53  ;;  %v188_v27 = vmul.f32 %v2110_v46, %v2110_v46 }
  0x91   :  { %v2116_v55 = vadd.f32 %v158_v51, %v116_v48  ;;  %v2118_v56 = vadd.f32 %v159_v52, %v117_v50  ;;  %178 = vadd.xlane.f32.xlu0 %v177_v54 }
  0x92   :  { %v134_v57 = vpop.permute.xlu0 %133 }
  0x93   :  { %v174_v58 = vadd.f32 %v2118_v56, %v2116_v55  ;;  %v162_v9 = vmul.f32 %v153_v30, %v134_v57  ;;  %v163_v10 = vmul.f32 %v157_v31, %v134_v57  ;;  %v186_v19 = vmul.f32 %v2116_v55, %v2116_v55 }
  0x94   :  { %v84_v61 = vpop.permute.xlu1 %83  ;;  %v187_v20 = vmul.f32 %v2118_v56, %v2118_v56 }
  0x95   :  { %v112_v62 = vmul.f32 %v103_v24, %v84_v61  ;;  %v113_v63 = vmul.f32 %v107_v25, %v84_v61  ;;  %175 = vadd.xlane.f32.xlu1 %v174_v58 }
  0x96   :  { %v194_v34 = vadd.f32 %v187_v20, %v186_v19 }
  0x97   :  { %v120_v11 = vadd.f32 %v112_v62, %v70_v59  ;;  %v121_v12 = vadd.f32 %v113_v63, %v71_v60 }
  0x98   :  { %v88_v13 = vpop.permute.xlu1 %87 }
  0x99   :  { %v2122_v14 = vadd.f32 %v162_v9, %v120_v11  ;;  %v2124_v15 = vadd.f32 %v163_v10, %v121_v12  ;;  %v114_v16 = vmul.f32 %v103_v24, %v88_v13  ;;  %v115_v17 = vmul.f32 %v107_v25, %v88_v13 }
  0x9b   :  { %v180_v18 = vadd.f32 %v2124_v15, %v2122_v14  ;;  %v122_v28 = vadd.f32 %v114_v16, %v72_v21  ;;  %v123_v29 = vadd.f32 %v115_v17, %v73_v22  ;;  %v190_v24 = vmul.f32 %v2122_v14, %v2122_v14 }
  0x9c   :  { %v191_v25 = vmul.f32 %v2124_v15, %v2124_v15 }
  0x9d   :  { %v138_v23 = vpop.permute.xlu1 %137  ;;  %181 = vadd.xlane.f32.xlu0 %v180_v18 }
  0x9e   :  { %v164_v32 = vmul.f32 %v153_v30, %v138_v23  ;;  %v165_v33 = vmul.f32 %v157_v31, %v138_v23  ;;  %v189_v30 = vmul.f32 %v2112_v47, %v2112_v47  ;;  %v200_v31 = vadd.f32 %v191_v25, %v190_v24 }
  0xa0   :  { %v2136_v35 = vadd.f32 %v164_v32, %v122_v28  ;;  %v2138_v37 = vadd.f32 %v165_v33, %v123_v29  ;;  %v197_v36 = vadd.f32 %v189_v30, %v188_v27  ;;  %v2019_v30 = vmov 4  }
  0xa1   :  { %195 = vadd.xlane.f32.xlu0 %v194_v34 }
  0xa2   :  { %v183_v26 = vadd.f32 %v2138_v37, %v2136_v35  ;;  %v192_v38 = vmul.f32 %v2136_v35, %v2136_v35  ;;  %v193_v39 = vmul.f32 %v2138_v37, %v2138_v37 }
  0xa4   :  { %184 = vadd.xlane.f32.xlu1 %v183_v26  ;;  %v203_v40 = vadd.f32 %v193_v39, %v192_v38 }
  0xa5   :  { %201 = vadd.xlane.f32.xlu0 %v200_v31 }
  0xa8   :  { %198 = vadd.xlane.f32.xlu1 %v197_v36 }
  0xac   :  { %204 = vadd.xlane.f32.xlu1 %v203_v40 }
 0x11e   :  { %v179_v42 = vpop.xlane.xlu0 %178 }
 0x11f   :  { %v207_v54 = vmul.f32 0.00390625, %v179_v42 }
 0x121   :  { %v215_v63 = vmul.f32 %v207_v54, %v207_v54 }
 0x122   :  { %v176_v43 = vpop.xlane.xlu1 %175 }
 0x123   :  { %v206_v45 = vmul.f32 0.00390625, %v176_v43 }
 0x125   :  { %v214_v49 = vmul.f32 %v206_v45, %v206_v45 }
 0x12a   :  { %v182_v44 = vpop.xlane.xlu0 %181 }
 0x12b   :  { %v208_v50 = vmul.f32 0.00390625, %v182_v44 }
 0x12d   :  { %v216_v58 = vmul.f32 %v208_v50, %v208_v50 }
 0x12e   :  { %v196_v48 = vpop.xlane.xlu0 %195 }
 0x12f   :  { %v210_v51 = vmul.f32 0.00390625, %v196_v48 }
 0x131   :  { %v218_v52 = vsub.f32 %v210_v51, %v214_v49  ;;  %v185_v53 = vpop.xlane.xlu1 %184 }
 0x132   :  { %v202_v57 = vpop.xlane.xlu0 %201  ;;  %v209_v9 = vmul.f32 0.00390625, %v185_v53 }
 0x133   :  { %v222_v59 = vadd.f32 1e-05, %v218_v52  ;;  %v212_v60 = vmul.f32 0.00390625, %v202_v57 }
 0x134   :  { %v217_v16 = vmul.f32 %v209_v9, %v209_v9 }
 0x135   :  { %1930 = vrsqrt.f32 %v222_v59  ;;  %v220_v61 = vsub.f32 %v212_v60, %v216_v58  ;;  %v199_v62 = vpop.xlane.xlu1 %198 }
 0x136   :  { %v211_v10 = vmul.f32 0.00390625, %v199_v62 }
 0x137   :  { %v224_v11 = vadd.f32 1e-05, %v220_v61 }
 0x138   :  { %v219_v12 = vsub.f32 %v211_v10, %v215_v63 }
 0x139   :  { %v205_v13 = vpop.xlane.xlu1 %204  ;;  %1932 = vrsqrt.f32 %v224_v11 }
 0x13a   :  { %v223_v17 = vadd.f32 1e-05, %v219_v12  ;;  %v213_v18 = vmul.f32 0.00390625, %v205_v13 }
 0x13c   :  { %1934 = vrsqrt.f32 %v223_v17  ;;  %v221_v19 = vsub.f32 %v213_v18, %v217_v16 }
 0x13e   :  { %v225_v20 = vadd.f32 1e-05, %v221_v19 }
 0x13f   :  { %v1931_v21 = vpop.eup %1930 }
 0x140   :  { %1936 = vrsqrt.f32 %v225_v20  ;;  %v230_v22 = vmul.f32 %v1931_v21, %v2062_v0 }
 0x142   :  { %v234_v23 = vmul.f32 %v230_v22, %v206_v45 }
 0x143   :  { %v1933_v28 = vpop.eup %1932 }
 0x144   :  { %242 = vrot.lane.b32.xlu0 %v234_v23, %s2018_s0  ;;  %v232_v34 = vmul.f32 %v1933_v28, %v2086_v6 }
 0x146   :  { %v1935_v29 = vpop.eup %1934  ;;  %v236_v26 = vmul.f32 %v232_v34, %v208_v50 }
 0x147   :  { %v231_v32 = vmul.f32 %v1935_v29, %v2071_v3 }
 0x149   :  { %v235_v33 = vmul.f32 %v231_v32, %v207_v54 }
 0x14a   :  { %v1937_v24 = vpop.eup %1936 }
 0x14b   :  { %244 = vrot.lane.b32.xlu1 %v235_v33, %s2018_s0  ;;  %v233_v25 = vmul.f32 %v1937_v24, %v2078_v4 }
 0x14d   :  { %v237_v27 = vmul.f32 %v233_v25, %v209_v9 }
 0x14f   :  { %246 = vrot.lane.b32.xlu1 %v236_v26, %s2018_s0  ;;  %248 = vrot.lane.b32.xlu0 %v237_v27, %s2018_s0 }
 0x153   :  { %260 = vperm.xlu1 %1921, %v230_v22   ;;  %265 = vperm.xlu0 %1922, %v231_v32  }
 0x157   :  { %275 = vperm.xlu1 %1921, %v233_v25   ;;  %270 = vperm.xlu0 %1922, %v232_v34  }
 0x15b   :  { %1923 = vset.pattern.permute.xlu1 %v2019_v30  ;;  %1924 = vset.pattern.permute.xlu0 %v2019_v30 }
 0x1b6   :  { %v243_v31 = vpop.permute.xlu0 %242 }
 0x1b7   :  { %v254_v36 = vsub.f32 %v2062_v0, %v243_v31 }
 0x1b9   :  { %288 = vperm.xlu1 %1923, %v254_v36  }
 0x1bd   :  { %v245_v38 = vpop.permute.xlu1 %244 }
 0x1be   :  { %v255_v39 = vsub.f32 %v2071_v3, %v245_v38 }
 0x1c0   :  { %293 = vperm.xlu1 %1923, %v255_v39  }
 0x1c1   :  { %v249_v40 = vpop.permute.xlu0 %248  ;;  %v247_v41 = vpop.permute.xlu1 %246 }
 0x1c2   :  { %v257_v42 = vsub.f32 %v2078_v4, %v249_v40  ;;  %v256_v43 = vsub.f32 %v2086_v6, %v247_v41 }
 0x1c4   :  { %303 = vperm.xlu1 %1923, %v257_v42   ;;  %298 = vperm.xlu0 %1924, %v256_v43  }
 0x1c8   :  { %1925 = vset.pattern.permute.xlu1 %v2015_v2  ;;  %1926 = vset.pattern.permute.xlu0 %v2015_v2 }
 0x1d2   :  { %v261_v44 = vpop.permute.xlu1 %260  ;;  %v266_v49 = vpop.permute.xlu0 %265 }
 0x1d3   :  { %v278_v48 = vmul.f32 %v261_v44, %v2116_v55  ;;  %v279_v3 = vmul.f32 %v261_v44, %v2118_v56  ;;  %v280_v61 = vmul.f32 %v266_v49, %v2110_v46  ;;  %v281_v63 = vmul.f32 %v266_v49, %v2112_v47 }
 0x1d6   :  { %v276_v45 = vpop.permute.xlu1 %275  ;;  %v271_v52 = vpop.permute.xlu0 %270 }
 0x1d7   :  { %v282_v57 = vmul.f32 %v271_v52, %v2122_v14  ;;  %v283_v9 = vmul.f32 %v271_v52, %v2124_v15  ;;  %v284_v15 = vmul.f32 %v276_v45, %v2136_v35  ;;  %v2202_v35 = vmul.f32 %v276_v45, %v2138_v37 }
 0x238   :  { %v289_v0 = vpop.permute.xlu1 %288 }
 0x239   :  { %v2166_v50 = vadd.f32 %v289_v0, %v278_v48  ;;  %v2168_v51 = vadd.f32 %v289_v0, %v279_v3 }
 0x23b   :  { %3509 = vst [vmem:[#allocation7_spill] sm:$0xff] %v2166_v50  ;;  %3510 = vst [vmem:[#allocation8_spill] sm:$0xff] %v2168_v51  ;;  %v317_v4 = vand.u32 2139095040, %v2166_v50  ;;  %v421_v6 = vand.u32 2139095040, %v2168_v51  ;;  %v3460_v58 = vand.u32 2147483647, %v2168_v51 }
 0x23c   :  { %v3456_v62 = vand.u32 2147483647, %v2166_v50  ;;  %v3531_v50 = vmov 683565275  }
 0x23d   :  { %v318_v53 = vshrl.u32 %v317_v4, 23  ;;  %v422_v54 = vshrl.u32 %v421_v6, 23  ;;  %v425_v10 = vand.u32 8388607, %v3460_v58 }
 0x23e   :  { %v321_v47 = vand.u32 8388607, %v3456_v62 }
 0x23f   :  { %v1789_v55 = vadd.s32 4294967169, %v318_v53  ;;  %v1793_v59 = vadd.s32 4294967169, %v422_v54  ;;  %v294_v56 = vpop.permute.xlu1 %293  ;;  %v426_v18 = vor.u32 8388608, %v425_v10  ;;  %v3467_v10 = vmov 2102212464  }
 0x240   :  { %v2182_v14 = vadd.f32 %v294_v56, %v280_v61  ;;  %v2184_v13 = vadd.f32 %v294_v56, %v281_v63  ;;  %v322_v33 = vor.u32 8388608, %v321_v47  ;;  %v3465_v63 = vmov 2131351028  }
 0x241   :  { %v324_v11 = vadd.s32 1, %v1789_v55  ;;  %v428_v12 = vadd.s32 1, %v1793_v59  ;;  %v2207_v25 = vshll.u32 %v426_v18, 8  ;;  %v3469_v59 = vmov 2475754826  }
 0x242   :  { %3512 = vst [vmem:[#allocation10_spill] sm:$0xff] %v2182_v14  ;;  %v525_v19 = vand.u32 2139095040, %v2182_v14  ;;  %v629_v22 = vand.u32 2139095040, %v2184_v13  ;;  %v2217_v42 = vshll.u32 %v322_v33, 8  ;;  %v3532_v14 = vmov 920167782  }
 0x243   :  { %v299_v2 = vpop.permute.xlu0 %298  ;;  %vm325_vm0 = vcmp.gt.s32.totalorder %v324_v11, 0  ;;  %v2194_v21 = vpop.permute.xlu1 %303  ;;  %vm429_vm1 = vcmp.gt.s32.totalorder %v428_v12, 0 }
 0x244   :  { %v2174_v60 = vadd.f32 %v299_v2, %v282_v57  ;;  %v2186_v16 = vadd.f32 %v299_v2, %v283_v9  ;;  %v326_v34 = vsel %vm325_vm0, %v324_v11, 0  ;;  %v2205_v24 = vadd.f32 %v2194_v21, %v284_v15  ;;  %3515 = vst [vmem:[#allocation13_spill] sm:$0xff] %v2217_v42 }
 0x245   :  { %v2209_v26 = vsel %vm429_vm1, %v428_v12, 0  ;;  %v526_v27 = vshrl.u32 %v525_v19, 23  ;;  %v630_v36 = vshrl.u32 %v629_v22, 23  ;;  %v2219_v43 = vshrl.u32 %v326_v34, 5 }
 0x246   :  { %3511 = vst [vmem:[#allocation9_spill] sm:$0xff] %v2174_v60  ;;  %3513 = vst [vmem:[#allocation11_spill] sm:$0xff] %v2186_v16  ;;  %v3459_v17 = vand.u32 2147483647, %v2174_v60  ;;  %v733_v46 = vand.u32 2139095040, %v2174_v60  ;;  %v837_v32 = vand.u32 2139095040, %v2186_v16 }
 0x247   :  { %v3458_v28 = vand.u32 2147483647, %v2186_v16  ;;  %3514 = vst [vmem:[#allocation12_spill] sm:$0xff] %v2205_v24  ;;  %v941_v37 = vand.u32 2139095040, %v2205_v24  ;;  %v2221_v44 = vand.u32 31, %v326_v34  ;;  %v2224_v48 = vand.u32 31, %v2209_v26 }
 0x248   :  { %v734_v20 = vshrl.u32 %v733_v46, 23  ;;  %v737_v23 = vand.u32 8388607, %v3459_v17  ;;  %v838_v31 = vshrl.u32 %v837_v32, 23  ;;  %v2226_v3 = vadd.s32 4294967169, %v526_v27 }
 0x249   :  { %v2213_v39 = vand.u32 8388607, %v3458_v28  ;;  %3516 = vst [vmem:[#allocation14_spill] sm:$0xff] %v2221_v44  ;;  %v942_v0 = vshrl.u32 %v941_v37, 23  ;;  %v2228_v6 = vadd.s32 4294967169, %v630_v36 }
 0x24a   :  { %v1805_v29 = vadd.s32 4294967169, %v734_v20  ;;  %v738_v38 = vor.u32 8388608, %v737_v23  ;;  %v1809_v40 = vadd.s32 4294967169, %v838_v31  ;;  %v3461_v57 = vmov 683565275  }
 0x24b   :  { %v842_v53 = vor.u32 8388608, %v2213_v39  ;;  %v1813_v61 = vadd.s32 4294967169, %v942_v0  ;;  %v3475_v12 = vmov 920167782   ;;  %v3463_v22 = vmov 1326507024  }
 0x24c   :  { %v740_v30 = vadd.s32 1, %v1805_v29  ;;  %v2230_v52 = vshll.u32 %v738_v38, 8  ;;  %v844_v54 = vadd.s32 1, %v1809_v40 }
 0x24e   :  { %vm741_vm2 = vcmp.gt.s32.totalorder %v740_v30, 0  ;;  %vm845_vm6 = vcmp.gt.s32.totalorder %v844_v54, 0 }
 0x24f   :  { %v742_v45 = vsel %vm741_vm2, %v740_v30, 0  ;;  %v846_v30 = vsel %vm845_vm6, %v844_v54, 0 }
 0x250   :  { %v743_v49 = vshrl.u32 %v742_v45, 5  ;;  %v744_v4 = vand.u32 31, %v742_v45  ;;  %v2248_v0 = vshrl.u32 %v846_v30, 5  ;;  %v848_v54 = vand.u32 31, %v846_v30 }
 0x252   :  { %v745_v2 = vsub.s32 32, %v744_v4  ;;  %v747_v55 = vshll.u32 %v3461_v57, %v744_v4  ;;  %v750_v56 = vshll.u32 %v3469_v59, %v744_v4  ;;  %v753_v9 = vshll.u32 %v3465_v63, %v744_v4 }
 0x253   :  { %v756_v11 = vshll.u32 %v3467_v10, %v744_v4  ;;  %v759_v46 = vshll.u32 %v3475_v12, %v744_v4  ;;  %vm762_vm3 = vcmp.lt.s32.totalorder %v743_v49, 1  ;;  %vm763_vm4 = vcmp.lt.s32.totalorder %v743_v49, 2 }
 0x254   :  { %v748_v47 = vshrl.u32 %v3469_v59, %v745_v2  ;;  %v751_v18 = vshrl.u32 %v3465_v63, %v745_v2  ;;  %v754_v15 = vshrl.u32 %v3467_v10, %v745_v2  ;;  %v746_v19 = vshrl.u32 %v3461_v57, %v745_v2 }
 0x255   :  { %v757_v20 = vshrl.u32 %v3475_v12, %v745_v2  ;;  %v760_v23 = vshrl.u32 %v3463_v22, %v745_v2  ;;  %vm764_vm5 = vcmp.lt.s32.totalorder %v743_v49, 3  ;;  %vm765_vm7 = vcmp.lt.s32.totalorder %v743_v49, 4 }
 0x256   :  { %v749_v29 = vor.u32 %v748_v47, %v747_v55  ;;  %v752_v32 = vor.u32 %v751_v18, %v750_v56  ;;  %v755_v33 = vor.u32 %v754_v15, %v753_v9  ;;  %vm866_vm8 = vcmp.lt.s32.totalorder %v2248_v0, 1 }
 0x257   :  { %v758_v34 = vor.u32 %v757_v20, %v756_v11  ;;  %v761_v27 = vor.u32 %v760_v23, %v759_v46  ;;  %v2255_v11 = vshll.u32 %v842_v53, 8  ;;  %v3457_v46 = vand.u32 2147483647, %v2205_v24 }
 0x258   :  { %v766_v31 = vsel %vm762_vm3, %v746_v19, %v749_v29  ;;  %v767_v36 = vsel %vm765_vm7, %v755_v33, 2102212464  ;;  %v770_v38 = vsel %vm762_vm3, %v749_v29, %v752_v32  ;;  %v774_v39 = vsel %vm762_vm3, %v752_v32, %v755_v33 }
 0x259   :  { %v768_v37 = vsel %vm764_vm5, %v752_v32, %v767_v36  ;;  %v771_v40 = vsel %vm765_vm7, %v758_v34, 920167782  ;;  %v775_v45 = vsel %vm765_vm7, %v761_v27, 1326507024  ;;  %v849_v23 = vsub.s32 32, %v848_v54 }
 0x25a   :  { %v769_v4 = vsel %vm763_vm4, %v766_v31, %v768_v37  ;;  %v772_v2 = vsel %vm764_vm5, %v755_v33, %v771_v40  ;;  %v776_v55 = vsel %vm764_vm5, %v758_v34, %v775_v45  ;;  %v948_v49 = vadd.s32 1, %v1813_v61 }
 0x25b   :  { %v773_v56 = vsel %vm763_vm4, %v770_v38, %v772_v2  ;;  %v777_v9 = vsel %vm763_vm4, %v774_v39, %v776_v55  ;;  %v785_v20 = vmul.u32 %v2230_v52, %v769_v4  ;;  %v851_v53 = vshll.u32 %v3461_v57, %v848_v54 }
 0x25c   :  { %v2259_v47 = vmul.u32.u64.low %v2230_v52, %v777_v9  ;;  %v2260_v18 = vmul.u32.u64.high %v2230_v52, %v777_v9, %v2259_v47  ;;  %v2263_v15 = vmul.u32.u64.low %v2230_v52, %v773_v56  ;;  %v2264_v19 = vmul.u32.u64.high %v2230_v52, %v773_v56, %v2263_v15 }
 0x25d   :  { %v854_v29 = vshll.u32 %v3469_v59, %v848_v54  ;;  %v857_v32 = vshll.u32 %v3465_v63, %v848_v54  ;;  %v860_v33 = vshll.u32 %v3467_v10, %v848_v54  ;;  %v852_v34 = vshrl.u32 %v3469_v59, %v849_v23 }
 0x25e   :  { %v855_v27 = vshrl.u32 %v3465_v63, %v849_v23  ;;  %v858_v30 = vshrl.u32 %v3467_v10, %v849_v23  ;;  %v863_v52 = vshll.u32 %v3475_v12, %v848_v54  ;;  %vm787_vm9 = vc.u32 %v2260_v18, %v2263_v15 }
 0x25f   :  { %v788_v61 = vadd.s32 1, %v2264_v19  ;;  %v861_v31 = vshrl.u32 %v3475_v12, %v849_v23  ;;  %vm867_vm10 = vcmp.lt.s32.totalorder %v2248_v0, 2  ;;  %v853_v36 = vor.u32 %v852_v34, %v851_v53 }
 0x260   :  { %v856_v38 = vor.u32 %v855_v27, %v854_v29  ;;  %v859_v39 = vor.u32 %v858_v30, %v857_v32  ;;  %v864_v37 = vshrl.u32 %v3463_v22, %v849_v23  ;;  %v850_v45 = vshrl.u32 %v3461_v57, %v849_v23 }
 0x261   :  { %v789_v40 = vsel %vm787_vm9, %v788_v61, %v2264_v19  ;;  %v862_v4 = vor.u32 %v861_v31, %v860_v33  ;;  %vm869_vm11 = vcmp.lt.s32.totalorder %v2248_v0, 4  ;;  %vm949_vm12 = vcmp.gt.s32.totalorder %v948_v49, 0 }
 0x262   :  { %v790_v2 = vadd.s32 %v789_v40, %v785_v20  ;;  %v865_v55 = vor.u32 %v864_v37, %v863_v52  ;;  %v871_v54 = vsel %vm869_vm11, %v859_v39, 2102212464  ;;  %vm868_vm13 = vcmp.lt.s32.totalorder %v2248_v0, 3 }
 0x263   :  { %v874_v56 = vsel %vm866_vm8, %v853_v36, %v856_v38  ;;  %v875_v9 = vsel %vm869_vm11, %v862_v4, 920167782  ;;  %v878_v47 = vsel %vm866_vm8, %v856_v38, %v859_v39  ;;  %v870_v19 = vsel %vm866_vm8, %v850_v45, %v853_v36 }
 0x264   :  { %v791_v53 = vadd.s32 536870912, %v790_v2  ;;  %v876_v23 = vsel %vm868_vm13, %v859_v39, %v875_v9  ;;  %v879_v29 = vsel %vm869_vm11, %v865_v55, 1326507024  ;;  %v872_v32 = vsel %vm868_vm13, %v856_v38, %v871_v54 }
 0x265   :  { %v877_v20 = vsel %vm867_vm10, %v874_v56, %v876_v23  ;;  %v880_v33 = vsel %vm868_vm13, %v862_v4, %v879_v29  ;;  %v950_v34 = vsel %vm949_vm12, %v948_v49, 0  ;;  %v2305_v31 = vshrl.u32 %v2209_v26, 5 }
 0x266   :  { %v2295_v27 = vshrl.u32 %v791_v53, 30  ;;  %v881_v30 = vsel %vm867_vm10, %v878_v47, %v880_v33  ;;  %v2300_v52 = vmul.u32.u64.low %v2255_v11, %v877_v20  ;;  %v2301_v61 = vmul.u32.u64.high %v2255_v11, %v877_v20, %v2300_v52 }
 0x267   :  { %v2308_v36 = vmul.u32.u64.low %v2255_v11, %v881_v30  ;;  %v2309_v38 = vmul.u32.u64.high %v2255_v11, %v881_v30, %v2308_v36  ;;  %v952_v39 = vand.u32 31, %v950_v34  ;;  %v2312_v49 = vsub.s32 32, %v2221_v44 }
 0x268   :  { %3517 = vst [vmem:[#allocation15_spill] sm:$0xff] %v2295_v27  ;;  %v2315_v37 = vsub.s32 32, %v2224_v48  ;;  %v532_v40 = vadd.s32 1, %v2226_v3  ;;  %v793_v45 = vshll.u32 %v2295_v27, 30  ;;  %v636_v4 = vadd.s32 1, %v2228_v6 }
 0x269   :  { %3518 = vst [vmem:[#allocation16_spill] sm:$0xff] %v2312_v49  ;;  %v873_v26 = vsel %vm867_vm10, %v870_v19, %v872_v32  ;;  %v945_v55 = vand.u32 8388607, %v3457_v46  ;;  %v2324_v54 = vsub.s32 32, %v952_v39  ;;  %v892_v56 = vadd.s32 1, %v2301_v61 }
 0x26a   :  { %v2327_v9 = vshrl.u32 %v950_v34, 5  ;;  %v955_v47 = vshll.u32 %v3461_v57, %v952_v39  ;;  %v958_v3 = vshll.u32 %v3469_v59, %v952_v39  ;;  %v2331_v53 = vsub.s32 %v790_v2, %v793_v45 }
 0x26b   :  { %vm891_vm14 = vc.u32 %v2309_v38, %v2300_v52  ;;  %v956_v6 = vshrl.u32 %v3469_v59, %v2324_v54  ;;  %v961_v0 = vshll.u32 %v3465_v63, %v952_v39  ;;  %v959_v19 = vshrl.u32 %v3465_v63, %v2324_v54 }
 0x26c   :  { %v962_v23 = vshrl.u32 %v3467_v10, %v2324_v54  ;;  %v964_v29 = vshll.u32 %v3467_v10, %v952_v39  ;;  %v967_v32 = vshll.u32 %v3475_v12, %v952_v39  ;;  %v893_v2 = vsel %vm891_vm14, %v892_v56, %v2301_v61 }
 0x26d   :  { %v2345_v20 = vor.u32 %v956_v6, %v955_v47  ;;  %v965_v33 = vshrl.u32 %v3475_v12, %v2324_v54  ;;  %v968_v34 = vshrl.u32 %v3463_v22, %v2324_v54  ;;  %v889_v30 = vmul.u32 %v2255_v11, %v873_v26 }
 0x26e   :  { %v2354_v36 = vadd.f32 %v2194_v21, %v2202_v35  ;;  %v2356_v45 = vor.u32 %v959_v19, %v958_v3  ;;  %v963_v7 = vor.u32 %v962_v23, %v961_v0  ;;  %vm637_vm15 = vcmp.gt.s32.totalorder %v636_v4, 0 }
 0x26f   :  { %v796_v61 = vsub.s32 0, %v2331_v53  ;;  %v966_v39 = vor.u32 %v965_v33, %v964_v29  ;;  %v969_v56 = vor.u32 %v968_v34, %v967_v32  ;;  %v445_v47 = vshrl.u32 %v3475_v12, %v2315_v37 }
 0x270   :  { %3519 = vst [vmem:[#allocation17_spill] sm:$0xff] %v2354_v36  ;;  %v2361_v6 = vadd.s32 %v893_v2, %v889_v30  ;;  %vm970_vm0 = vcmp.lt.s32.totalorder %v2327_v9, 1  ;;  %vm973_vm1 = vcmp.lt.s32.totalorder %v2327_v9, 4  ;;  %v946_v11 = vor.u32 8388608, %v945_v55 }
 0x271   :  { %vm972_vm2 = vcmp.lt.s32.totalorder %v2327_v9, 3  ;;  %v978_v21 = vsel %vm970_vm0, %v2345_v20, %v2356_v45  ;;  %v979_v35 = vsel %vm973_vm1, %v966_v39, 920167782  ;;  %v638_v26 = vsel %vm637_vm15, %v636_v4, 0 }
 0x272   :  { %v980_v3 = vsel %vm972_vm2, %v963_v7, %v979_v35  ;;  %v982_v0 = vsel %vm970_vm0, %v2356_v45, %v963_v7  ;;  %v1045_v55 = vand.u32 2139095040, %v2354_v36  ;;  %vm533_vm3 = vcmp.gt.s32.totalorder %v532_v40, 0 }
 0x273   :  { %v1806_v19 = vmin.u32 %v796_v61, %v2331_v53  ;;  %vm971_vm4 = vcmp.lt.s32.totalorder %v2327_v9, 2  ;;  %v983_v23 = vsel %vm973_vm1, %v969_v56, 1326507024  ;;  %v340_v4 = vshll.u32 %v3467_v10, %v2221_v44 }
 0x274   :  { %v895_v29 = vadd.s32 536870912, %v2361_v6  ;;  %v981_v32 = vsel %vm971_vm4, %v978_v21, %v980_v3  ;;  %v984_v2 = vsel %vm972_vm2, %v966_v39, %v983_v23  ;;  %v444_v33 = vshll.u32 %v3467_v10, %v2224_v48 }
 0x275   :  { %v2391_v34 = vand.u32 31, %v638_v26  ;;  %v985_v30 = vsel %vm971_vm4, %v982_v0, %v984_v2  ;;  %v2395_v61 = vshll.u32 %v946_v11, 8  ;;  %v341_v56 = vshrl.u32 %v3475_v12, %v2312_v49 }
 0x276   :  { %v448_v35 = vshrl.u32 %v3463_v22, %v2315_v37  ;;  %v2401_v21 = vsel %vm533_vm3, %v532_v40, 0  ;;  %v1046_v3 = vshrl.u32 %v1045_v55, 23  ;;  %v2403_v39 = vor.u32 %v445_v47, %v444_v33 }
 0x277   :  { %v798_v23 = vclz %v1806_v19  ;;  %v2406_v1 = vmul.u32.u64.low %v2395_v61, %v981_v32  ;;  %v2407_v5 = vmul.u32.u64.high %v2395_v61, %v981_v32, %v2406_v1  ;;  %v2410_v0 = vshrl.u32 %v895_v29, 30 }
 0x278   :  { %v2413_v11 = vmul.u32.u64.low %v2395_v61, %v985_v30  ;;  %v2414_v2 = vmul.u32.u64.high %v2395_v61, %v985_v30, %v2413_v11  ;;  %v1817_v62 = vadd.s32 4294967169, %v1046_v3  ;;  %v2418_v40 = vshll.u32 %v3475_v12, %v2221_v44 }
 0x279   :  { %3520 = vst [vmem:[#allocation18_spill] sm:$0xff] %v2406_v1  ;;  %3521 = vst [vmem:[#allocation19_spill] sm:$0xff] %v2410_v0  ;;  %v447_v47 = vshll.u32 %v3475_v12, %v2224_v48  ;;  %v2423_v55 = vand.u32 31, %v2401_v21  ;;  %v2426_v19 = vsub.s32 32, %v2391_v34  ;;  %v2428_v29 = vor.u32 %v341_v56, %v340_v4 }
 0x27a   :  { %3522 = vst [vmem:[#allocation20_spill] sm:$0xff] %v2414_v2  ;;  %v2432_v32 = vshrl.u32 %v3463_v22, %v2312_v49  ;;  %vm453_vm5 = vcmp.lt.s32.totalorder %v2305_v31, 4  ;;  %v1052_v33 = vadd.s32 1, %v1817_v62  ;;  %v2440_v11 = vshrl.u32 %v638_v26, 5 }
 0x27b   :  { %3523 = vst [vmem:[#allocation21_spill] sm:$0xff] %v2423_v55  ;;  %3524 = vst [vmem:[#allocation22_spill] sm:$0xff] %v2428_v29  ;;  %v449_v30 = vor.u32 %v448_v35, %v447_v47  ;;  %v2438_v3 = vsel %vm453_vm5, %v2403_v39, 920167782  ;;  %v975_v46 = vsel %vm973_vm1, %v963_v7, 2102212464  ;;  %v954_v28 = vshrl.u32 %v3461_v57, %v2324_v54 }
 0x27c   :  { %v1807_v4 = vadd.s32 4294967294, %v798_v23  ;;  %v897_v56 = vshll.u32 %v2410_v0, 30  ;;  %vm1053_vm6 = vcmp.gt.s32.totalorder %v1052_v33, 0  ;;  %v2448_v62 = vsub.s32 32, %v2423_v55 }
 0x27d   :  { %v653_v35 = vshrl.u32 %v3475_v12, %v2426_v19  ;;  %v3474_v47 = vand.u32 2147483647, %v2354_v36  ;;  %v1054_v26 = vsel %vm1053_vm6, %v1052_v33, 0  ;;  %v656_v17 = vshrl.u32 %v3463_v22, %v2426_v19 }
 0x27e   :  { %3525 = vst [vmem:[#allocation23_spill] sm:$0xff] %v2448_v62  ;;  %v974_v7 = vsel %vm970_vm0, %v954_v28, %v2345_v20  ;;  %v976_v54 = vsel %vm972_vm2, %v2356_v45, %v975_v46  ;;  %v1056_v23 = vand.u32 31, %v1054_v26  ;;  %v2463_v58 = vsel %vm453_vm5, %v449_v30, 1326507024 }
 0x27f   :  { %v652_v41 = vshll.u32 %v3467_v10, %v2391_v34  ;;  %v655_v33 = vshll.u32 %v3475_v12, %v2391_v34  ;;  %v996_v57 = vadd.s32 1, %v2407_v5  ;;  %vm1808_vm7 = vcmp.lt.s32.totalorder %v1807_v4, 0 }
 0x280   :  { %v2471_v28 = vsub.s32 %v2361_v6, %v897_v56  ;;  %vm995_vm8 = vc.u32 %v2414_v2, %v2406_v1  ;;  %v1057_v46 = vsub.s32 32, %v1056_v23  ;;  %v2477_v20 = vshll.u32 %v3467_v10, %v2423_v55 }
 0x281   :  { %v2481_v45 = vshll.u32 %v3475_v12, %v2423_v55  ;;  %v977_v30 = vsel %vm971_vm4, %v974_v7, %v976_v54  ;;  %v1049_v22 = vand.u32 8388607, %v3474_v47  ;;  %v2489_v6 = vshrl.u32 %v3475_v12, %v2448_v62 }
 0x282   :  { %3526 = vst [vmem:[#allocation24_spill] sm:$0xff] %v2471_v28  ;;  %v2491_v56 = vor.u32 %v653_v35, %v652_v41  ;;  %v657_v63 = vor.u32 %v656_v17, %v655_v33  ;;  %vm661_vm9 = vcmp.lt.s32.totalorder %v2440_v11, 4  ;;  %v2494_v10 = vsel %vm1808_vm7, 0, %v1807_v4 }
 0x283   :  { %v997_v59 = vsel %vm995_vm8, %v996_v57, %v2407_v5  ;;  %v1060_v27 = vshrl.u32 %v3527_v8, %v1057_v46  ;;  %v3528_v9 = vmov 2131351028   ;;  %v3529_v54 = vmov 1326507024  }
 0x284   :  { %v1063_v7 = vshrl.u32 %v3528_v9, %v1057_v46  ;;  %v2501_v47 = vshrl.u32 %v3529_v54, %v2448_v62  ;;  %v900_v12 = vsub.s32 0, %v2471_v28  ;;  %v993_v41 = vmul.u32 %v2395_v61, %v977_v30 }
 0x285   :  { %v3530_v35 = vmov 2102212464   ;;  %v1050_v33 = vor.u32 8388608, %v1049_v22  ;;  %v1059_v4 = vshll.u32 %v3531_v50, %v1056_v23  ;;  %v1062_v0 = vshll.u32 %v3527_v8, %v1056_v23 }
 0x286   :  { %v1066_v17 = vshrl.u32 %v3530_v35, %v1057_v46  ;;  %v1065_v5 = vshll.u32 %v3528_v9, %v1056_v23  ;;  %v2512_v57 = vsel %vm661_vm9, %v2491_v56, 920167782  ;;  %v2516_v24 = vsel %vm661_vm9, %v657_v63, 1326507024 }
 0x287   :  { %v806_v61 = vsub.s32 4294967266, %v2494_v10  ;;  %v998_v30 = vadd.s32 %v997_v59, %v993_v41  ;;  %v1055_v36 = vshrl.u32 %v1054_v26, 5  ;;  %v1061_v22 = vor.u32 %v1060_v27, %v1059_v4 }
 0x288   :  { %v1064_v16 = vor.u32 %v1063_v7, %v1062_v0  ;;  %v1067_v55 = vor.u32 %v1066_v17, %v1065_v5  ;;  %v1068_v62 = vshll.u32 %v3530_v35, %v1056_v23  ;;  %v1069_v42 = vshrl.u32 %v3532_v14, %v1057_v46 }
 0x289   :  { %v1071_v60 = vshll.u32 %v3532_v14, %v1056_v23  ;;  %v1072_v44 = vshrl.u32 %v3529_v54, %v1057_v46  ;;  %v1810_v49 = vmin.u32 %v900_v12, %v2471_v28  ;;  %v2524_v1 = vshll.u32 %v1050_v33, 8 }
 0x28a   :  { %v435_v63 = vshll.u32 %v3531_v50, %v2224_v48  ;;  %v436_v59 = vshrl.u32 %v3527_v8, %v2315_v37  ;;  %v999_v27 = vadd.s32 536870912, %v998_v30  ;;  %v1070_v0 = vor.u32 %v1069_v42, %v1068_v62 }
 0x28b   :  { %v1073_v26 = vor.u32 %v1072_v44, %v1071_v60  ;;  %v439_v7 = vshrl.u32 %v3528_v9, %v2315_v37  ;;  %vm1074_vm10 = vcmp.lt.s32.totalorder %v1055_v36, 1  ;;  %vm1076_vm11 = vcmp.lt.s32.totalorder %v1055_v36, 3 }
 0x28c   :  { %vm1077_vm12 = vcmp.lt.s32.totalorder %v1055_v36, 4  ;;  %v442_v12 = vshrl.u32 %v3530_v35, %v2315_v37  ;;  %v1082_v23 = vsel %vm1074_vm10, %v1061_v22, %v1064_v16  ;;  %v1086_v17 = vsel %vm1074_vm10, %v1064_v16, %v1067_v55 }
 0x28d   :  { %v1083_v41 = vsel %vm1077_vm12, %v1070_v0, 920167782  ;;  %v1087_v33 = vsel %vm1077_vm12, %v1073_v26, 1326507024  ;;  %v902_v4 = vclz %v1810_v49  ;;  %v438_v60 = vshll.u32 %v3527_v8, %v2224_v48 }
 0x28e   :  { %v1084_v5 = vsel %vm1076_vm11, %v1067_v55, %v1083_v41  ;;  %v441_v42 = vshll.u32 %v3528_v9, %v2224_v48  ;;  %v2541_v44 = vshrl.u32 %v999_v27, 30  ;;  %vm1075_vm13 = vcmp.lt.s32.totalorder %v1055_v36, 2 }
 0x28f   :  { %v1079_v62 = vsel %vm1077_vm12, %v1067_v55, 2102212464  ;;  %v1088_v54 = vsel %vm1076_vm11, %v1070_v0, %v1087_v33  ;;  %v1058_v14 = vshrl.u32 %v3531_v50, %v1057_v46  ;;  %v1085_v2 = vsel %vm1075_vm13, %v1082_v23, %v1084_v5 }
 0x290   :  { %v1089_v49 = vsel %vm1075_vm13, %v1086_v17, %v1088_v54  ;;  %v437_v26 = vor.u32 %v436_v59, %v435_v63  ;;  %v440_v29 = vor.u32 %v439_v7, %v438_v60  ;;  %v443_v28 = vor.u32 %v442_v12, %v441_v42 }
 0x291   :  { %v2548_v41 = vmul.u32.u64.low %v2524_v1, %v1089_v49  ;;  %v2549_v51 = vmul.u32.u64.high %v2524_v1, %v1089_v49, %v2548_v41  ;;  %v1811_v48 = vadd.s32 4294967294, %v902_v4  ;;  %v1078_v27 = vsel %vm1074_vm10, %v1058_v14, %v1061_v22 }
 0x292   :  { %v1080_v55 = vsel %vm1076_vm11, %v1064_v16, %v1079_v62  ;;  %v434_v0 = vshrl.u32 %v3531_v50, %v2315_v37  ;;  %v786_v46 = vadd.s32 %v2263_v15, %v2260_v18  ;;  %v1001_v54 = vshll.u32 %v2541_v44, 30 }
 0x293   :  { %v2559_v63 = vmul.u32.u64.low %v2524_v1, %v1085_v2  ;;  %v2560_v59 = vmul.u32.u64.high %v2524_v1, %v1085_v2, %v2559_v63  ;;  %v802_v7 = vsub.s32 32, %v2494_v10  ;;  %v807_v12 = vadd.s32 127, %v806_v61 }
 0x294   :  { %v2566_v14 = vadd.s32 %v2300_v52, %v2309_v38  ;;  %vm450_vm14 = vcmp.lt.s32.totalorder %v2305_v31, 1  ;;  %v1081_v16 = vsel %vm1075_vm13, %v1078_v27, %v1080_v55  ;;  %vm452_vm15 = vcmp.lt.s32.totalorder %v2305_v31, 3 }
 0x295   :  { %v455_v18 = vsel %vm453_vm5, %v443_v28, 2102212464  ;;  %v458_v15 = vsel %vm450_vm14, %v437_v26, %v440_v29  ;;  %vm1812_vm0 = vcmp.lt.s32.totalorder %v1811_v48, 0  ;;  %vm1099_vm1 = vc.u32 %v2549_v51, %v2559_v63 }
 0x296   :  { %vm451_vm2 = vcmp.lt.s32.totalorder %v2305_v31, 2  ;;  %v460_v37 = vsel %vm452_vm15, %v443_v28, %v2438_v3  ;;  %v2577_v52 = vsub.s32 %v998_v30, %v1001_v54  ;;  %v1100_v38 = vadd.s32 1, %v2560_v59 }
 0x297   :  { %v461_v36 = vsel %vm451_vm2, %v458_v15, %v460_v37  ;;  %v462_v2 = vsel %vm450_vm14, %v440_v29, %v443_v28  ;;  %v1097_v61 = vmul.u32 %v2524_v1, %v1081_v16  ;;  %v454_v22 = vsel %vm450_vm14, %v434_v0, %v437_v26 }
 0x298   :  { %v456_v23 = vsel %vm452_vm15, %v440_v29, %v455_v18  ;;  %v464_v17 = vsel %vm452_vm15, %v2403_v39, %v2463_v58  ;;  %v1101_v33 = vsel %vm1099_vm1, %v1100_v38, %v2560_v59  ;;  %v803_v28 = vshll.u32 %v2331_v53, %v2494_v10 }
 0x299   :  { %v465_v3 = vsel %vm451_vm2, %v462_v2, %v464_v17  ;;  %v2589_v30 = vmul.u32.u64.low %v2207_v25, %v461_v36  ;;  %v2590_v4 = vmul.u32.u64.high %v2207_v25, %v461_v36, %v2589_v30  ;;  %v1102_v5 = vadd.s32 %v1101_v33, %v1097_v61 }
 0x29a   :  { %v2596_v1 = vmul.u32.u64.low %v2207_v25, %v465_v3  ;;  %v2597_v29 = vmul.u32.u64.high %v2207_v25, %v465_v3, %v2596_v1  ;;  %v804_v60 = vshrl.u32 %v786_v46, %v802_v7  ;;  %v808_v58 = vshll.u32 %v807_v12, 23 }
 0x29b   :  { %v2600_v39 = vsel %vm1812_vm0, 0, %v1811_v48  ;;  %v457_v42 = vsel %vm451_vm2, %v454_v22, %v456_v23  ;;  %v1004_v62 = vsub.s32 0, %v2577_v52  ;;  %v1103_v49 = vadd.s32 536870912, %v1102_v5 }
 0x29c   :  { %v3533_v26 = vand.u32 2147483647, %v2184_v13  ;;  %v644_v10 = vshrl.u32 %v3527_v8, %v2426_v19  ;;  %v476_v53 = vadd.s32 1, %v2590_v4  ;;  %v643_v27 = vshll.u32 %v3531_v50, %v2391_v34 }
 0x29d   :  { %v646_v48 = vshll.u32 %v3527_v8, %v2391_v34  ;;  %v647_v31 = vshrl.u32 %v3528_v9, %v2426_v19  ;;  %v2616_v55 = vshrl.u32 %v1103_v49, 30  ;;  %v473_v0 = vmul.u32 %v2207_v25, %v457_v42 }
 0x29e   :  { %v633_v41 = vand.u32 8388607, %v3533_v26  ;;  %vm475_vm3 = vc.u32 %v2597_v29, %v2589_v30  ;;  %v649_v46 = vshll.u32 %v3528_v9, %v2391_v34  ;;  %v645_v59 = vor.u32 %v644_v10, %v643_v27 }
 0x29f   :  { %v477_v54 = vsel %vm475_vm3, %v476_v53, %v2590_v4  ;;  %v648_v7 = vor.u32 %v647_v31, %v646_v48  ;;  %v650_v12 = vshrl.u32 %v3530_v35, %v2426_v19  ;;  %v805_v16 = vor.u32 %v804_v60, %v803_v28 }
 0x2a0   :  { %v809_v18 = vor.u32 4788187, %v808_v58  ;;  %v1814_v15 = vmin.u32 %v1004_v62, %v2577_v52  ;;  %v478_v37 = vadd.s32 %v477_v54, %v473_v0  ;;  %v906_v25 = vsub.s32 32, %v2600_v39 }
 0x2a1   :  { %v1105_v38 = vshll.u32 %v2616_v55, 30  ;;  %v634_v36 = vor.u32 8388608, %v633_v41  ;;  %v651_v2 = vor.u32 %v650_v12, %v649_v46  ;;  %v910_v34 = vsub.s32 4294967266, %v2600_v39 }
 0x2a2   :  { %v479_v61 = vadd.s32 536870912, %v478_v37  ;;  %vm658_vm4 = vcmp.lt.s32.totalorder %v2440_v11, 1  ;;  %vm660_vm5 = vcmp.lt.s32.totalorder %v2440_v11, 3  ;;  %vm349_vm6 = vcmp.lt.s32.totalorder %v2219_v43, 4 }
 0x2a3   :  { %vm659_vm7 = vcmp.lt.s32.totalorder %v2440_v11, 2  ;;  %v663_v22 = vsel %vm661_vm9, %v651_v2, 2102212464  ;;  %v666_v23 = vsel %vm658_vm4, %v645_v59, %v648_v7  ;;  %v668_v17 = vsel %vm660_vm5, %v651_v2, %v2512_v57 }
 0x2a4   :  { %v1006_v33 = vclz %v1814_v15  ;;  %v2641_v3 = vshrl.u32 %v479_v61, 30  ;;  %v642_v4 = vshrl.u32 %v3531_v50, %v2426_v19  ;;  %v669_v28 = vsel %vm659_vm7, %v666_v23, %v668_v17 }
 0x2a5   :  { %v2647_v1 = vsub.s32 %v1102_v5, %v1105_v38  ;;  %v670_v60 = vsel %vm658_vm4, %v648_v7, %v651_v2  ;;  %v672_v58 = vsel %vm660_vm5, %v2491_v56, %v2516_v24  ;;  %v674_v57 = vshll.u32 %v634_v36, 8  ;;  %v3537_v2 = vld [vmem:[#allocation20_spill] sm:$0xff] }
 0x2a6   :  { %v481_v42 = vshll.u32 %v2641_v3, 30  ;;  %v662_v62 = vsel %vm658_vm4, %v642_v4, %v645_v59  ;;  %v664_v19 = vsel %vm660_vm5, %v648_v7, %v663_v22  ;;  %v673_v5 = vsel %vm659_vm7, %v670_v60, %v672_v58  ;;  %v3534_v7 = vld [vmem:[#allocation24_spill] sm:$0xff] }
 0x2a7   :  { %v2662_v49 = vmul.u32.u64.low %v674_v57, %v673_v5  ;;  %v2663_v26 = vmul.u32.u64.high %v674_v57, %v673_v5, %v2662_v49  ;;  %v2665_v41 = vmul.u32.u64.low %v674_v57, %v669_v28  ;;  %v2666_v10 = vmul.u32.u64.high %v674_v57, %v669_v28, %v2665_v41  ;;  %v3539_v28 = vld [vmem:[#allocation16_spill] sm:$0xff] }
 0x2a8   :  { %v345_v24 = vor.u32 %v2432_v32, %v2418_v40  ;;  %v810_v56 = vand.u32 2147483647, %v809_v18  ;;  %v911_v53 = vadd.s32 127, %v910_v34  ;;  %v2671_v27 = vsub.s32 %v478_v37, %v481_v42  ;;  %v3538_v34 = vld [vmem:[#allocation18_spill] sm:$0xff] }
 0x2a9   :  { %v2674_v48 = vshrl.u32 %v2401_v21, 5  ;;  %v2678_v31 = vor.u32 %v2489_v6, %v2477_v20  ;;  %v553_v0 = vor.u32 %v2501_v47, %v2481_v45  ;;  %v908_v46 = vshrl.u32 %v2566_v14, %v906_v25  ;;  %v3535_v47 = vld [vmem:[#allocation22_spill] sm:$0xff] }
 0x2aa   :  { %v812_v54 = vcvt.s32.f32 %v805_v16  ;;  %v1815_v59 = vadd.s32 4294967294, %v1006_v33  ;;  %v484_v40 = vsub.s32 0, %v2671_v27  ;;  %v665_v32 = vsel %vm659_vm7, %v662_v62, %v664_v19  ;;  %v3540_v49 = vld [vmem:[#allocation14_spill] sm:$0xff] }
 0x2ab   :  { %v907_v21 = vshll.u32 %v3534_v7, %v2600_v39  ;;  %v1108_v12 = vsub.s32 0, %v2647_v1  ;;  %vm683_vm8 = vc.u32 %v2663_v26, %v2665_v41  ;;  %v684_v20 = vadd.s32 1, %v2666_v10  ;;  %v3536_v39 = vld [vmem:[#allocation8_spill] sm:$0xff] }
 0x2ac   :  { %v355_v45 = vsel %vm349_vm6, %v3535_v47, 920167782  ;;  %v2695_v6 = vmul.f32 %v812_v54, %v810_v56  ;;  %v912_v14 = vshll.u32 %v911_v53, 23  ;;  %v1794_v11 = vmin.u32 %v484_v40, %v2671_v27 }
 0x2ad   :  { %vm557_vm9 = vcmp.lt.s32.totalorder %v2674_v48, 4  ;;  %v2699_v16 = vor.u32 %v908_v46, %v907_v21  ;;  %vm420_vm10 = vcmp.lt.s32.totalorder %v3536_v39, 0  ;;  %v681_v18 = vmul.u32 %v674_v57, %v665_v32  ;;  %v3541_v32 = vld [vmem:[#allocation9_spill] sm:$0xff] }
 0x2ae   :  { %v685_v15 = vsel %vm683_vm8, %v684_v20, %v2666_v10  ;;  %v359_v37 = vsel %vm349_vm6, %v345_v24, 1326507024  ;;  %v2708_v25 = vsel %vm557_vm9, %v2678_v31, 920167782  ;;  %vm1816_vm11 = vcmp.lt.s32.totalorder %v1815_v59, 0 }
 0x2af   :  { %v486_v38 = vclz %v1794_v11  ;;  %v2712_v36 = vsel %vm557_vm9, %v553_v0, 1326507024  ;;  %v2716_v61 = vadd.s32 %v3538_v34, %v3537_v2  ;;  %v1818_v22 = vmin.u32 %v1108_v12, %v2647_v1 }
 0x2b0   :  { %v686_v23 = vadd.s32 %v685_v15, %v681_v18  ;;  %v814_v17 = vxor.u32 2147483648, %v2695_v6  ;;  %v913_v33 = vor.u32 4788187, %v912_v14  ;;  %v338_v60 = vshrl.u32 %v3530_v35, %v3539_v28 }
 0x2b1   :  { %v1795_v4 = vadd.s32 4294967294, %v486_v38  ;;  %v916_v58 = vcvt.s32.f32 %v2699_v16  ;;  %v2723_v57 = vsel %vm1816_vm11, 0, %v1815_v59  ;;  %v335_v62 = vshrl.u32 %v3528_v9, %v3539_v28 }
 0x2b2   :  { %v687_v42 = vadd.s32 536870912, %v686_v23  ;;  %v504_v19 = vsub.s32 4, %v2641_v3  ;;  %v332_v5 = vshrl.u32 %v3527_v8, %v3539_v28  ;;  %v337_v10 = vshll.u32 %v3528_v9, %v3540_v49 }
 0x2b3   :  { %vm1796_vm12 = vcmp.lt.s32.totalorder %v1795_v4, 0  ;;  %v1110_v24 = vclz %v1818_v22  ;;  %v334_v0 = vshll.u32 %v3527_v8, %v3540_v49  ;;  %v474_v46 = vadd.s32 %v2589_v30, %v2597_v29 }
 0x2b4   :  { %v489_v56 = vsel %vm1796_vm12, 0, %v1795_v4  ;;  %v2732_v53 = vshrl.u32 %v687_v42, 30  ;;  %v331_v59 = vshll.u32 %v3531_v50, %v3540_v49  ;;  %v339_v40 = vor.u32 %v338_v60, %v337_v10 }
 0x2b5   :  { %v490_v54 = vsub.s32 32, %v489_v56  ;;  %vm732_vm13 = vcmp.lt.s32.totalorder %v3541_v32, 0  ;;  %v914_v7 = vand.u32 2147483647, %v913_v33  ;;  %v494_v21 = vsub.s32 4294967266, %v489_v56 }
 0x2b6   :  { %v689_v12 = vshll.u32 %v2732_v53, 30  ;;  %v336_v20 = vor.u32 %v335_v62, %v334_v0  ;;  %v1014_v14 = vsub.s32 4294967266, %v2723_v57  ;;  %v2746_v16 = vsel %vm420_vm10, %v504_v19, %v2641_v3 }
 0x2b7   :  { %v492_v11 = vshrl.u32 %v474_v46, %v490_v54  ;;  %v333_v30 = vor.u32 %v332_v5, %v331_v59  ;;  %v1819_v29 = vadd.s32 4294967294, %v1110_v24  ;;  %v3542_v18 = vand.u32 2147483647, %v3536_v39  ;;  %v3545_v24 = vld [vmem:[#allocation13_spill] sm:$0xff] }
 0x2b8   :  { %v491_v38 = vshll.u32 %v2671_v27, %v489_v56  ;;  %v495_v2 = vadd.s32 127, %v494_v21  ;;  %v2755_v34 = vsub.s32 %v686_v23, %v689_v12  ;;  %v330_v22 = vshrl.u32 %v3531_v50, %v3539_v28  ;;  %v3546_v21 = vld [vmem:[#allocation10_spill] sm:$0xff] }
 0x2b9   :  { %vm2750_vm14 = vcmp.le.f32.partialorder %v3542_v18, 0.7853982  ;;  %vm346_vm15 = vcmp.lt.s32.totalorder %v2219_v43, 1  ;;  %vm348_vm0 = vcmp.lt.s32.totalorder %v2219_v43, 3  ;;  %v351_v3 = vsel %vm349_vm6, %v339_v40, 2102212464 }
 0x2ba   :  { %v493_v33 = vor.u32 %v492_v11, %v491_v38  ;;  %v496_v4 = vshll.u32 %v495_v2, 23  ;;  %v692_v60 = vsub.s32 0, %v2755_v34  ;;  %v358_v42 = vsel %vm346_vm15, %v336_v20, %v339_v40 }
 0x2bb   :  { %vm347_vm1 = vcmp.lt.s32.totalorder %v2219_v43, 2  ;;  %v354_v27 = vsel %vm346_vm15, %v333_v30, %v336_v20  ;;  %v356_v23 = vsel %vm348_vm0, %v339_v40, %v355_v45  ;;  %v360_v62 = vsel %vm348_vm0, %v3535_v47, %v359_v37 }
 0x2bc   :  { %vm1820_vm2 = vcmp.lt.s32.totalorder %v1819_v29, 0  ;;  %v497_v28 = vor.u32 4788187, %v496_v4  ;;  %v1802_v19 = vmin.u32 %v692_v60, %v2755_v34  ;;  %v361_v5 = vsel %vm347_vm1, %v358_v42, %v360_v62 }
 0x2bd   :  { %v350_v49 = vsel %vm346_vm15, %v330_v22, %v333_v30  ;;  %v352_v10 = vsel %vm348_vm0, %v336_v20, %v351_v3  ;;  %v2770_v56 = vmul.u32.u64.low %v3545_v24, %v361_v5  ;;  %v2771_v0 = vmul.u32.u64.high %v3545_v24, %v361_v5, %v2770_v56 }
 0x2be   :  { %v498_v46 = vand.u32 2147483647, %v497_v28  ;;  %v500_v54 = vcvt.s32.f32 %v493_v33  ;;  %v694_v59 = vclz %v1802_v19  ;;  %v357_v45 = vsel %vm347_vm1, %v354_v27, %v356_v23  ;;  %v3548_v33 = vld [vmem:[#allocation21_spill] sm:$0xff] }
 0x2bf   :  { %v2778_v47 = vsel %vm732_vm13, %v814_v17, %v2695_v6  ;;  %v2780_v37 = vmul.f32 %v916_v58, %v914_v7  ;;  %v2782_v40 = vsel %vm1820_vm2, 0, %v1819_v29  ;;  %v522_v12 = vand.u32 2147483647, %v3546_v21  ;;  %v3547_v29 = vld [vmem:[#allocation23_spill] sm:$0xff] }
 0x2c0   :  { %v2785_v20 = vadd.s32 127, %v1014_v14  ;;  %v501_v11 = vmul.f32 %v500_v54, %v498_v46  ;;  %v1803_v30 = vadd.s32 4294967294, %v694_v59  ;;  %v353_v18 = vsel %vm347_vm1, %v350_v49, %v352_v10 }
 0x2c1   :  { %v507_v38 = vsel %vm2750_vm14, 0, %v2746_v16  ;;  %v682_v6 = vadd.s32 %v2665_v41, %v2663_v26  ;;  %v2795_v17 = vmul.u32.u64.low %v3545_v24, %v357_v45  ;;  %v2796_v58 = vmul.u32.u64.high %v3545_v24, %v357_v45, %v2795_v17 }
 0x2c2   :  { %v1118_v7 = vsub.s32 4294967266, %v2782_v40  ;;  %v502_v14 = vxor.u32 2147483648, %v501_v11  ;;  %vm1804_vm3 = vcmp.lt.s32.totalorder %v1803_v30, 0  ;;  %v540_v43 = vshrl.u32 %v3527_v8, %v3547_v29 }
 0x2c3   :  { %v697_v2 = vsel %vm1804_vm3, 0, %v1803_v30  ;;  %v369_v22 = vmul.u32 %v3545_v24, %v353_v18  ;;  %v529_v3 = vand.u32 8388607, %v522_v12  ;;  %v539_v26 = vshll.u32 %v3531_v50, %v3548_v33 }
 0x2c4   :  { %v503_v41 = vsel %vm420_vm10, %v502_v14, %v501_v11  ;;  %v698_v4 = vsub.s32 32, %v697_v2  ;;  %v702_v60 = vsub.s32 4294967266, %v697_v2  ;;  %vm371_vm4 = vc.u32 %v2771_v0, %v2795_v17 }
 0x2c5   :  { %v506_v42 = vsel %vm2750_vm14, %v3536_v39, %v503_v41  ;;  %v699_v27 = vshll.u32 %v2755_v34, %v697_v2  ;;  %v372_v23 = vadd.s32 1, %v2796_v58  ;;  %v541_v62 = vor.u32 %v540_v43, %v539_v26 }
 0x2c6   :  { %v700_v28 = vshrl.u32 %v682_v6, %v698_v4  ;;  %v703_v19 = vadd.s32 127, %v702_v60  ;;  %v542_v5 = vshll.u32 %v3527_v8, %v3548_v33  ;;  %v543_v49 = vshrl.u32 %v3528_v9, %v3547_v29 }
 0x2c7   :  { %1938 = vcosq.f32 %v506_v42  ;;  %v373_v10 = vsel %vm371_vm4, %v372_v23, %v2796_v58  ;;  %v545_v24 = vshll.u32 %v3528_v9, %v3548_v33  ;;  %v546_v34 = vshrl.u32 %v3530_v35, %v3547_v29 }
 0x2c8   :  { %vm628_vm5 = vcmp.lt.s32.totalorder %v2184_v13, 0  ;;  %v701_v56 = vor.u32 %v700_v28, %v699_v27  ;;  %v704_v46 = vshll.u32 %v703_v19, 23  ;;  %v374_v54 = vadd.s32 %v373_v10, %v369_v22 }
 0x2c9   :  { %v544_v59 = vor.u32 %v543_v49, %v542_v5  ;;  %v1119_v45 = vadd.s32 127, %v1118_v7  ;;  %1940 = vsinq.f32 %v506_v42  ;;  %v530_v11 = vor.u32 8388608, %v529_v3 }
 0x2ca   :  { %v547_v30 = vor.u32 %v546_v34, %v545_v24  ;;  %v705_v18 = vor.u32 4788187, %v704_v46  ;;  %v375_v6 = vadd.s32 536870912, %v374_v54  ;;  %vm554_vm6 = vcmp.lt.s32.totalorder %v2674_v48, 1 }
 0x2cb   :  { %vm556_vm7 = vcmp.lt.s32.totalorder %v2674_v48, 3  ;;  %vm555_vm8 = vcmp.lt.s32.totalorder %v2674_v48, 2  ;;  %v562_v58 = vsel %vm554_vm6, %v541_v62, %v544_v59  ;;  %v708_v2 = vcvt.s32.f32 %v701_v56 }
 0x2cc   :  { %v564_v14 = vsel %vm556_vm7, %v547_v30, %v2708_v25  ;;  %v566_v7 = vsel %vm554_vm6, %v544_v59, %v547_v30  ;;  %v706_v43 = vand.u32 2147483647, %v705_v18  ;;  %v2836_v22 = vshrl.u32 %v375_v6, 30 }
 0x2cd   :  { %v565_v3 = vsel %vm555_vm8, %v562_v58, %v564_v14  ;;  %v712_v33 = vsub.s32 4, %v2732_v53  ;;  %v559_v26 = vsel %vm557_vm9, %v547_v30, 2102212464  ;;  %v568_v25 = vsel %vm556_vm7, %v2678_v31, %v2712_v36 }
 0x2ce   :  { %v570_v41 = vshll.u32 %v530_v11, 8  ;;  %v709_v4 = vmul.f32 %v708_v2, %v706_v43  ;;  %v377_v60 = vshll.u32 %v2836_v22, 30  ;;  %v538_v42 = vshrl.u32 %v3531_v50, %v3547_v29 }
 0x2cf   :  { %v569_v27 = vsel %vm555_vm8, %v566_v7, %v568_v25  ;;  %v560_v36 = vsel %vm556_vm7, %v544_v59, %v559_v26  ;;  %v1010_v24 = vsub.s32 32, %v2723_v57  ;;  %v1114_v34 = vsub.s32 32, %v2782_v40  ;;  %v3552_v26 = vld [vmem:[#allocation11_spill] sm:$0xff] }
 0x2d0   :  { %v2852_v23 = vmul.u32.u64.low %v570_v41, %v569_v27  ;;  %v2853_v28 = vmul.u32.u64.high %v570_v41, %v569_v27, %v2852_v23  ;;  %v2855_v19 = vmul.u32.u64.low %v570_v41, %v565_v3  ;;  %v2856_v5 = vmul.u32.u64.high %v570_v41, %v565_v3, %v2855_v19 }
 0x2d1   :  { %v710_v49 = vxor.u32 2147483648, %v709_v4  ;;  %v2859_v10 = vsub.s32 %v374_v54, %v377_v60  ;;  %v558_v31 = vsel %vm554_vm6, %v538_v42, %v541_v62  ;;  %v1939_v29 = vpop.eup %1938  ;;  %v511_v56 = vadd.s32 3, %v507_v38 }
 0x2d2   :  { %v713_v46 = vsel %vm628_vm5, %v712_v33, %v2732_v53  ;;  %v1120_v54 = vshll.u32 %v1119_v45, 23  ;;  %v3549_v62 = vand.u32 2147483647, %v2184_v13  ;;  %v1016_v16 = vshll.u32 %v2785_v20, 23 }
 0x2d3   :  { %v711_v59 = vsel %vm628_vm5, %v710_v49, %v709_v4  ;;  %v380_v30 = vsub.s32 0, %v2859_v10  ;;  %v1941_v15 = vpop.eup %1940  ;;  %v1098_v38 = vadd.s32 %v2559_v63, %v2549_v51  ;;  %v561_v45 = vsel %vm555_vm8, %v558_v31, %v560_v36 }
 0x2d4   :  { %vm2876_vm9 = vcmp.le.f32.partialorder %v3549_v62, 0.7853982  ;;  %vm579_vm10 = vc.u32 %v2853_v28, %v2855_v19  ;;  %v512_v58 = vand.u32 3, %v511_v56  ;;  %v580_v51 = vadd.s32 1, %v2856_v5 }
 0x2d5   :  { %v714_v53 = vsel %vm2876_vm9, %v2184_v13, %v711_v59  ;;  %v715_v18 = vsel %vm2876_vm9, 0, %v713_v46  ;;  %v1790_v6 = vmin.u32 %v380_v30, %v2859_v10  ;;  %v1116_v20 = vshrl.u32 %v1098_v38, %v1114_v34 }
 0x2d6   :  { %1942 = vcosq.f32 %v714_v53  ;;  %v918_v63 = vxor.u32 2147483648, %v2780_v37  ;;  %v1121_v14 = vor.u32 4788187, %v1120_v54  ;;  %v577_v48 = vmul.u32 %v570_v41, %v561_v45 }
 0x2d7   :  { %1944 = vsinq.f32 %v714_v53  ;;  %v382_v7 = vclz %v1790_v6  ;;  %v1115_v43 = vshll.u32 %v2647_v1, %v2782_v40  ;;  %v518_v2 = vxor.u32 2147483648, %v1939_v29 }
 0x2d8   :  { %v719_v3 = vadd.s32 3, %v715_v18  ;;  %v581_v33 = vsel %vm579_vm10, %v580_v51, %v2856_v5  ;;  %vm836_vm11 = vcmp.lt.s32.totalorder %v3552_v26, 0  ;;  %v1011_v25 = vshll.u32 %v2577_v52, %v2723_v57 }
 0x2d9   :  { %v515_v4 = vxor.u32 2147483648, %v1941_v15  ;;  %v1791_v60 = vadd.s32 4294967294, %v382_v7  ;;  %v582_v42 = vadd.s32 %v581_v33, %v577_v48  ;;  %v1012_v27 = vshrl.u32 %v2716_v61, %v1010_v24 }
 0x2da   :  { %v1017_v23 = vor.u32 4788187, %v1016_v16  ;;  %v1117_v49 = vor.u32 %v1116_v20, %v1115_v43  ;;  %vm514_vm12 = vcmp.eq.s32.totalorder %v512_v58, 0  ;;  %v1122_v41 = vand.u32 2147483647, %v1121_v14 }
 0x2db   :  { %vm510_vm14 = vweird.f32 %v3536_v39  ;;  %vm517_vm15 = vcmp.eq.s32.totalorder %v512_v58, 2  ;;  %vm1792_vm0 = vcmp.lt.s32.totalorder %v1791_v60, 0  ;;  %v583_v1 = vadd.s32 536870912, %v582_v42 }
 0x2dc   :  { %v519_v40 = vsel %vm517_vm15, %v518_v2, %v1941_v15  ;;  %vm718_vm1 = vweird.f32 %v2184_v13  ;;  %v720_v5 = vand.u32 3, %v719_v3  ;;  %v370_v52 = vadd.s32 %v2795_v17, %v2771_v0 }
 0x2dd   :  { %v385_v57 = vsel %vm1792_vm0, 0, %v1791_v60  ;;  %v516_v31 = vsel %vm514_vm12, %v1939_v29, %v515_v4  ;;  %v2909_v24 = vshrl.u32 %v583_v1, 30  ;;  %v1013_v34 = vor.u32 %v1012_v27, %v1011_v25 }
 0x2de   :  { %v386_v36 = vsub.s32 32, %v385_v57  ;;  %v390_v61 = vsub.s32 4294967266, %v385_v57  ;;  %v1018_v56 = vand.u32 2147483647, %v1017_v23  ;;  %v1124_v46 = vcvt.s32.f32 %v1117_v49 }
 0x2df   :  { %vm513_vm2 = vcmp.lt.s32.totalorder %v512_v58, 2  ;;  %v387_v62 = vshll.u32 %v2859_v10, %v385_v57  ;;  %v585_v30 = vshll.u32 %v2909_v24, 30  ;;  %vm725_vm3 = vcmp.eq.s32.totalorder %v720_v5, 2 }
 0x2e0   :  { %v1943_v54 = vpop.eup %1942  ;;  %v388_v11 = vshrl.u32 %v370_v52, %v386_v36  ;;  %v391_v59 = vadd.s32 127, %v390_v61  ;;  %v1125_v16 = vmul.f32 %v1124_v46, %v1122_v41  ;;  %v520_v0 = vsel %vm513_vm2, %v516_v31, %v519_v40 }
 0x2e1   :  { %v1945_v15 = vpop.eup %1944  ;;  %v726_v17 = vxor.u32 2147483648, %v1943_v54  ;;  %v586_v45 = vsub.s32 %v582_v42, %v585_v30  ;;  %v919_v18 = vsel %vm836_vm11, %v918_v63, %v2780_v37  ;;  %v1020_v6 = vcvt.s32.f32 %v1013_v34  ;;  %v3559_v42 = vld [vmem:[#allocation17_spill] sm:$0xff] }
 0x2e2   :  { %v723_v29 = vxor.u32 2147483648, %v1945_v15  ;;  %v389_v38 = vor.u32 %v388_v11, %v387_v62  ;;  %v392_v53 = vshll.u32 %v391_v59, 23  ;;  %vm722_vm4 = vcmp.eq.s32.totalorder %v720_v5, 0  ;;  %v3564_v62 = vld [vmem:[#allocation19_spill] sm:$0xff] }
 0x2e3   :  { %v727_v10 = vsel %vm725_vm3, %v726_v17, %v1945_v15  ;;  %vm721_vm5 = vcmp.lt.s32.totalorder %v720_v5, 2  ;;  %v588_v51 = vsub.s32 0, %v586_v45  ;;  %v1021_v14 = vmul.f32 %v1020_v6, %v1018_v56  ;;  %v3560_v5 = vld [vmem:[#allocation12_spill] sm:$0xff]  ;;  %v3568_v15 = vld [vmem:[#allocation7_spill] sm:$0xff] }
 0x2e4   :  { %v724_v20 = vsel %vm722_vm4, %v1943_v54, %v723_v29  ;;  %v393_v58 = vor.u32 4788187, %v392_v53  ;;  %v1126_v7 = vxor.u32 2147483648, %v1125_v16  ;;  %v521_v48 = vsel %vm510_vm14, nan, %v520_v0 }
 0x2e5   :  { %v728_v43 = vsel %vm721_vm5, %v724_v20, %v727_v10  ;;  %v396_v33 = vcvt.s32.f32 %v389_v38  ;;  %v1798_v25 = vmin.u32 %v588_v51, %v586_v45  ;;  %v3553_v37 = vand.u32 2147483647, %v3541_v32 }
 0x2e6   :  { %v729_v2 = vsel %vm718_vm1, nan, %v728_v43  ;;  %v394_v3 = vand.u32 2147483647, %v393_v58  ;;  %v3556_v4 = vand.u32 2147483647, %v3552_v26  ;;  %vm1044_vm8 = vcmp.lt.s32.totalorder %v3559_v42, 0 }
 0x2e7   :  { %vm2922_vm6 = vcmp.le.f32.partialorder %v3553_v37, 0.7853982  ;;  %v1839_v39 = vpack.c.bf16 %v729_v2, %v521_v48  ;;  %v590_v23 = vclz %v1798_v25  ;;  %v1022_v41 = vxor.u32 2147483648, %v1021_v14 }
 0x2e8   :  { %vm2928_vm7 = vcmp.le.f32.partialorder %v3556_v4, 0.7853982  ;;  %v818_v13 = vsel %vm2922_vm6, %v3541_v32, %v2778_v47  ;;  %v397_v27 = vmul.f32 %v396_v33, %v394_v3  ;;  %v1127_v1 = vsel %vm1044_vm8, %v1126_v7, %v1125_v16 }
 0x2e9   :  { %v922_v49 = vsel %vm2928_vm7, %v3552_v26, %v919_v18  ;;  %1840 = vmatprep.subr.bf16.mxu0 %v1839_v39  ;;  %1847 = vmatprep.subr.bf16.mxu1 %v1839_v39  ;;  %v1799_v40 = vadd.s32 4294967294, %v590_v23  ;;  %1946 = vcosq.f32 %v818_v13  ;;  %vm940_vm9 = vcmp.lt.s32.totalorder %v3560_v5, 0 }
 0x2ea   :  { %v3561_v47 = vand.u32 2147483647, %v3559_v42  ;;  %1948 = vcosq.f32 %v922_v49  ;;  %v398_v31 = vxor.u32 2147483648, %v397_v27  ;;  %v1023_v36 = vsel %vm940_vm9, %v1022_v41, %v1021_v14  ;;  %v3572_v14 = vld [vmem:[#allocation15_spill] sm:$0xff] }
 0x2eb   :  { %vm1800_vm12 = vcmp.lt.s32.totalorder %v1799_v40, 0  ;;  %1950 = vsinq.f32 %v922_v49  ;;  %v400_v61 = vsub.s32 4, %v2836_v22  ;;  %v578_v56 = vadd.s32 %v2855_v19, %v2853_v28 }
 0x2ec   :  { %vm2945_vm10 = vcmp.le.f32.partialorder %v3561_v47, 0.7853982  ;;  %v593_v34 = vsel %vm1800_vm12, 0, %v1799_v40  ;;  %v920_v11 = vsub.s32 4, %v3564_v62  ;;  %v3565_v59 = vand.u32 2147483647, %v3560_v5 }
 0x2ed   :  { %v1130_v57 = vsel %vm2945_vm10, %v3559_v42, %v1127_v1  ;;  %v594_v46 = vsub.s32 32, %v593_v34  ;;  %v598_v54 = vsub.s32 4294967266, %v593_v34  ;;  %vm316_vm15 = vcmp.lt.s32.totalorder %v3568_v15, 0 }
 0x2ee   :  { %vm2960_vm14 = vcmp.le.f32.partialorder %v3565_v59, 0.7853982  ;;  %1952 = vcosq.f32 %v1130_v57  ;;  %v1128_v16 = vsub.s32 4, %v2616_v55  ;;  %v399_v0 = vsel %vm316_vm15, %v398_v31, %v397_v27 }
 0x2ef   :  { %v595_v17 = vshll.u32 %v586_v45, %v593_v34  ;;  %v596_v29 = vshrl.u32 %v578_v56, %v594_v46  ;;  %v599_v38 = vadd.s32 127, %v598_v54  ;;  %v1026_v28 = vsel %vm2960_vm14, %v3560_v5, %v1023_v36 }
 0x2f0   :  { %1954 = vsinq.f32 %v1130_v57  ;;  %v3569_v19 = vand.u32 2147483647, %v3568_v15  ;;  %v401_v18 = vsel %vm316_vm15, %v400_v61, %v2836_v22  ;;  %v921_v45 = vsel %vm836_vm11, %v920_v11, %v3564_v62 }
 0x2f1   :  { %v597_v6 = vor.u32 %v596_v29, %v595_v17  ;;  %v600_v10 = vshll.u32 %v599_v38, 23  ;;  %1956 = vsinq.f32 %v818_v13  ;;  %v1129_v51 = vsel %vm1044_vm8, %v1128_v16, %v2616_v55 }
 0x2f2   :  { %vm2971_vm0 = vcmp.le.f32.partialorder %v3569_v19, 0.7853982  ;;  %1958 = vcosq.f32 %v1026_v28  ;;  %v816_v7 = vsub.s32 4, %v3572_v14  ;;  %v2026_v22 = vmov 0.0  }
 0x2f3   :  { %v402_v20 = vsel %vm2971_vm0, %v3568_v15, %v399_v0  ;;  %v601_v58 = vor.u32 4788187, %v600_v10  ;;  %1219 = vmatprep.mubr.f32.mxu0 %v2026_v22  ;;  %1225 = vmatprep.mubr.f32.mxu1 %v2026_v22  ;;  %v2986_v48 = vpop.eup %1946  ;;  %1960 = vsinq.f32 %v1026_v28  ;;  %v403_v43 = vsel %vm2971_vm0, 0, %v401_v18 }
 0x2f4   :  { %v923_v2 = vsel %vm2928_vm7, 0, %v921_v45  ;;  %v1024_v3 = vsub.s32 4, %v2541_v44  ;;  %v1949_v33 = vpop.eup %1948  ;;  %1962 = vcosq.f32 %v402_v20  ;;  %v604_v55 = vcvt.s32.f32 %v597_v6 }
 0x2f5   :  { %v602_v25 = vand.u32 2147483647, %v601_v58  ;;  %v1951_v37 = vpop.eup %1950  ;;  %1964 = vsinq.f32 %v402_v20  ;;  %v608_v4 = vsub.s32 4, %v2909_v24  ;;  %v1131_v39 = vsel %vm2945_vm10, 0, %v1129_v51 }
 0x2f6   :  { %v407_v13 = vadd.s32 3, %v403_v43  ;;  %v927_v23 = vadd.s32 3, %v923_v2  ;;  %v817_v60 = vsel %vm732_vm13, %v816_v7, %v3572_v14  ;;  %v1025_v41 = vsel %vm940_vm9, %v1024_v3, %v2541_v44 }
 0x2f7   :  { %v605_v27 = vmul.f32 %v604_v55, %v602_v25  ;;  %vm524_vm11 = vcmp.lt.s32.totalorder %v3546_v21, 0  ;;  %v1135_v40 = vadd.s32 3, %v1131_v39  ;;  %vm3005_vm1 = vcmp.le.f32.partialorder %v522_v12, 0.7853982 }
 0x2f8   :  { %v1953_v49 = vpop.eup %1952  ;;  %v609_v57 = vsel %vm524_vm11, %v608_v4, %v2909_v24  ;;  %v819_v31 = vsel %vm2922_vm6, 0, %v817_v60  ;;  %v3012_v36 = vand.u32 3, %v407_v13  ;;  %v928_v44 = vand.u32 3, %v927_v23 }
 0x2f9   :  { %v606_v1 = vxor.u32 2147483648, %v605_v27  ;;  %v1027_v34 = vsel %vm2960_vm14, 0, %v1025_v41  ;;  %v931_v46 = vxor.u32 2147483648, %v1951_v37  ;;  %v934_v54 = vxor.u32 2147483648, %v1949_v33 }
 0x2fa   :  { %v1955_v47 = vpop.eup %1954  ;;  %v611_v24 = vsel %vm3005_vm1, 0, %v609_v57  ;;  %v1136_v63 = vand.u32 3, %v1135_v40  ;;  %v823_v11 = vadd.s32 3, %v819_v31  ;;  %v1142_v0 = vxor.u32 2147483648, %v1953_v49 }
 0x2fb   :  { %v607_v61 = vsel %vm524_vm11, %v606_v1, %v605_v27  ;;  %v1957_v56 = vpop.eup %1956  ;;  %v1139_v16 = vxor.u32 2147483648, %v1955_v47  ;;  %v1031_v30 = vadd.s32 3, %v1027_v34  ;;  %vm410_vm13 = vcmp.eq.s32.totalorder %v3012_v36, 0 }
 0x2fc   :  { %v610_v12 = vsel %vm3005_vm1, %v3546_v21, %v607_v61  ;;  %v1959_v62 = vpop.eup %1958  ;;  %vm413_vm2 = vcmp.eq.s32.totalorder %v3012_v36, 2  ;;  %vm926_vm3 = vweird.f32 %v3552_v26  ;;  %vm930_vm4 = vcmp.eq.s32.totalorder %v928_v44, 0 }
 0x2fd   :  { %1966 = vcosq.f32 %v610_v12  ;;  %v1961_v59 = vpop.eup %1960  ;;  %v615_v38 = vadd.s32 3, %v611_v24  ;;  %v932_v28 = vsel %vm930_vm4, %v1949_v33, %v931_v46  ;;  %vm933_vm5 = vcmp.eq.s32.totalorder %v928_v44, 2 }
 0x2fe   :  { %1968 = vsinq.f32 %v610_v12  ;;  %v1963_v17 = vpop.eup %1962  ;;  %v827_v19 = vxor.u32 2147483648, %v1957_v56  ;;  %vm409_vm6 = vcmp.lt.s32.totalorder %v3012_v36, 2  ;;  %v935_v53 = vsel %vm933_vm5, %v934_v54, %v1951_v37 }
 0x2ff   :  { %v1965_v29 = vpop.eup %1964  ;;  %vm1138_vm7 = vcmp.eq.s32.totalorder %v1136_v63, 0  ;;  %vm1141_vm8 = vcmp.eq.s32.totalorder %v1136_v63, 2  ;;  %v824_v18 = vand.u32 3, %v823_v11  ;;  %v830_v45 = vxor.u32 2147483648, %v2986_v48 }
 0x300   :  { %v1140_v6 = vsel %vm1138_vm7, %v1953_v49, %v1139_v16  ;;  %v1143_v10 = vsel %vm1141_vm8, %v1142_v0, %v1955_v47  ;;  %v1032_v20 = vand.u32 3, %v1031_v30  ;;  %v411_v58 = vxor.u32 2147483648, %v1965_v29 }
 0x301   :  { %v414_v51 = vxor.u32 2147483648, %v1963_v17  ;;  %v1035_v14 = vxor.u32 2147483648, %v1961_v59  ;;  %v1038_v7 = vxor.u32 2147483648, %v1959_v62  ;;  %v616_v22 = vand.u32 3, %v615_v38 }
 0x302   :  { %vm929_vm9 = vcmp.lt.s32.totalorder %v928_v44, 2  ;;  %vm1134_vm10 = vweird.f32 %v3559_v42  ;;  %vm1137_vm12 = vcmp.lt.s32.totalorder %v1136_v63, 2  ;;  %vm826_vm14 = vcmp.eq.s32.totalorder %v824_v18, 0 }
 0x303   :  { %v936_v43 = vsel %vm929_vm9, %v932_v28, %v935_v53  ;;  %v1144_v2 = vsel %vm1137_vm12, %v1140_v6, %v1143_v10  ;;  %vm829_vm15 = vcmp.eq.s32.totalorder %v824_v18, 2  ;;  %v828_v3 = vsel %vm826_vm14, %v2986_v48, %v827_v19 }
 0x304   :  { %v831_v33 = vsel %vm829_vm15, %v830_v45, %v1957_v56  ;;  %vm1034_vm0 = vcmp.eq.s32.totalorder %v1032_v20, 0  ;;  %vm1037_vm11 = vcmp.eq.s32.totalorder %v1032_v20, 2  ;;  %v412_v55 = vsel %vm410_vm13, %v1963_v17, %v411_v58  ;;  %v1232_v58 = vld [vmem:[%s3449_s3] sm:$0xff] }
 0x305   :  { %v415_v37 = vsel %vm413_vm2, %v414_v51, %v1965_v29  ;;  %v1036_v4 = vsel %vm1034_vm0, %v1959_v62, %v1035_v14  ;;  %v1039_v39 = vsel %vm1037_vm11, %v1038_v7, %v1961_v59  ;;  %vm618_vm1 = vcmp.eq.s32.totalorder %v616_v22, 0  ;;  %v1233_v51 = vld [vmem:[%s3449_s3 + $0x8] sm:$0xff] }
 0x306   :  { %vm621_vm4 = vcmp.eq.s32.totalorder %v616_v22, 2  ;;  %v937_v23 = vsel %vm926_vm3, nan, %v936_v43  ;;  %v1145_v60 = vsel %vm1134_vm10, nan, %v1144_v2  ;;  %vm825_vm5 = vcmp.lt.s32.totalorder %v824_v18, 2 }
 0x307   :  { %v1967_v25 = vpop.eup %1966  ;;  %vm1033_vm7 = vcmp.lt.s32.totalorder %v1032_v20, 2  ;;  %v416_v49 = vsel %vm409_vm6, %v412_v55, %v415_v37  ;;  %v832_v1 = vsel %vm825_vm5, %v828_v3, %v831_v33  ;;  %vm406_vm13 = vweird.f32 %v3568_v15 }
 0x308   :  { %v1969_v13 = vpop.eup %1968  ;;  %v622_v27 = vxor.u32 2147483648, %v1967_v25  ;;  %v1040_v40 = vsel %vm1033_vm7, %v1036_v4, %v1039_v39  ;;  %vm614_vm2 = vweird.f32 %v3546_v21  ;;  %vm617_vm8 = vcmp.lt.s32.totalorder %v616_v22, 2  ;;  %v1146_v21 = vld [vmem:[%s3448_s2] sm:$0xff] }
 0x309   :  { %v619_v48 = vxor.u32 2147483648, %v1969_v13  ;;  %v1843_v52 = vpack.c.bf16 %v1145_v60, %v937_v23  ;;  %vm822_vm3 = vweird.f32 %v3541_v32  ;;  %vm1030_vm9 = vweird.f32 %v3560_v5  ;;  %v1147_v32 = vld [vmem:[%s3448_s2 + $0x8] sm:$0xff] }
 0x30a   :  { %v623_v41 = vsel %vm621_vm4, %v622_v27, %v1969_v13  ;;  %v417_v42 = vsel %vm406_vm13, nan, %v416_v49  ;;  %v833_v31 = vsel %vm822_vm3, nan, %v832_v1  ;;  %v1041_v36 = vsel %vm1030_vm9, nan, %v1040_v40 }
 0x30b   :  { %v620_v47 = vsel %vm618_vm1, %v1967_v25, %v619_v48  ;;  %v1845_v44 = vpack.c.bf16 %v1041_v36, %v833_v31  ;;  %vm1148_vm6 = vcmask 261120   ;;  %v3575_v33 = vmov 2  }
 0x30c   :  { %v624_v26 = vsel %vm617_vm8, %v620_v47, %v623_v41  ;;  %v3576_v25 = vmov 1  }
 0x30d   :  { %v625_v57 = vsel %vm614_vm2, nan, %v624_v26 }
 0x30e   :  { %v1841_v61 = vpack.c.bf16 %v625_v57, %v417_v42 }
 0x310   :  { %1842 = vmatpush1.bf16.msra.mxu0 %v1841_v61  ;;  %1849 = vmatpush1.bf16.msra.mxu1 %v1841_v61 }
 0x311   :  { %1844 = vmatprep.subr.bf16.mxu0 %v1843_v52  ;;  %1848 = vmatprep.subr.bf16.mxu1 %v1843_v52 }
 0x314   :  { %1846 = vmatpush1.bf16.msra.mxu0 %v1845_v44  ;;  %1850 = vmatpush1.bf16.msra.mxu1 %v1845_v44 }
 0x317   :  { %1821 = vmatmul.mubr.msk.f32.vlgmr.msra.gmra.mrb[0].mxu0 %vm1148_vm6, %v1146_v21  ;;  %1822 = vmatmul.mubr.msk.f32.vlgmr.msra.gmra.mrb[0].mxu1 %vm1148_vm6, %v1147_v32 }
 0x3ea   :  { %v1221_v5 = vpop.f32.mrb[0].mxu0  ;;  %v1227_v15 = vpop.f32.mrb[0].mxu1 }
 0x3eb   :  { %v1223_v34 = vpop.f32.mrb[1].mxu0  ;;  %v3048_v56 = vpop.f32.mrb[1].mxu1  ;;  %v1240_v12 = vmul.f32 %v1221_v5, %v1221_v5  ;;  %v1242_v46 = vmul.f32 %v1227_v15, %v1227_v15 }
 0x3ec   :  { %v1241_v54 = vmul.f32 %v1223_v34, %v1223_v34  ;;  %v1243_v62 = vmul.f32 %v3048_v56, %v3048_v56  ;;  %v1237_v24 = vadd.f32 %v3048_v56, %v1227_v15  ;;  %v1234_v63 = vadd.f32 %v1223_v34, %v1221_v5 }
 0x3ee   :  { %1238 = vadd.xlane.f32.xlu0 %v1237_v24  ;;  %1235 = vadd.xlane.f32.xlu1 %v1234_v63  ;;  %v1244_v11 = vadd.f32 %v1241_v54, %v1240_v12  ;;  %v1247_v59 = vadd.f32 %v1243_v62, %v1242_v46 }
 0x3f2   :  { %1245 = vadd.xlane.f32.xlu0 %v1244_v11  ;;  %1248 = vadd.xlane.f32.xlu1 %v1247_v59 }
 0x47b   :  { %v1239_v16 = vpop.xlane.xlu0 %1238  ;;  %v1236_v0 = vpop.xlane.xlu1 %1235 }
 0x47c   :  { %v1251_v30 = vmul.f32 0.00390625, %v1239_v16  ;;  %v1250_v17 = vmul.f32 0.00390625, %v1236_v0 }
 0x47e   :  { %v1254_v29 = vmul.f32 %v1250_v17, %v1250_v17  ;;  %v1255_v19 = vmul.f32 %v1251_v30, %v1251_v30 }
 0x47f   :  { %v1246_v38 = vpop.xlane.xlu0 %1245  ;;  %v1249_v28 = vpop.xlane.xlu1 %1248 }
 0x480   :  { %v1252_v53 = vmul.f32 0.00390625, %v1246_v38  ;;  %v1253_v18 = vmul.f32 0.00390625, %v1249_v28  ;;  %v3577_v38 = vmov 920167782  }
 0x482   :  { %v1256_v6 = vsub.f32 %v1252_v53, %v1254_v29  ;;  %v1257_v10 = vsub.f32 %v1253_v18, %v1255_v19  ;;  %v3578_v19 = vmov 1326507024  }
 0x484   :  { %v1258_v45 = vadd.f32 1e-05, %v1256_v6  ;;  %v1259_v20 = vadd.f32 1e-05, %v1257_v10 }
 0x486   :  { %1970 = vrsqrt.f32 %v1258_v45 }
 0x487   :  { %1972 = vrsqrt.f32 %v1259_v20 }
 0x490   :  { %v1971_v14 = vpop.eup %1970 }
 0x491   :  { %v1973_v7 = vpop.eup %1972  ;;  %v1262_v22 = vmul.f32 %v1971_v14, %v1232_v58 }
 0x492   :  { %v1263_v43 = vmul.f32 %v1973_v7, %v1233_v51 }
 0x493   :  { %v1264_v2 = vmul.f32 %v1262_v22, %v1250_v17 }
 0x494   :  { %v1265_v3 = vmul.f32 %v1263_v43, %v1251_v30 }
 0x495   :  { %1268 = vrot.lane.b32.xlu0 %v1264_v2, %s2018_s0 }
 0x496   :  { %1270 = vrot.lane.b32.xlu1 %v1265_v3, %s2018_s0 }
 0x499   :  { %1283 = vperm.xlu0 %1926, %v1263_v43  }
 0x49a   :  { %1278 = vperm.xlu1 %1925, %v1262_v22  }
 0x49d   :  { %1928 = vset.pattern.permute.xlu0 %v3575_v33 }
 0x49e   :  { %1927 = vset.pattern.permute.xlu1 %v3576_v25  ;;  %1722 = vperm.xlu0 %1928, %v1232_v58  }
 0x507   :  { %v1269_v55 = vpop.permute.xlu0 %1268 }
 0x508   :  { %v1274_v37 = vsub.f32 %v1232_v58, %v1269_v55  ;;  %v1271_v4 = vpop.permute.xlu1 %1270 }
 0x509   :  { %v1275_v39 = vsub.f32 %v1233_v51, %v1271_v4 }
 0x50a   :  { %1292 = vperm.xlu1 %1927, %v1274_v37  }
 0x50e   :  { %1297 = vperm.xlu1 %1927, %v1275_v39  }
 0x512   :  { %1929 = vset.pattern.permute.xlu1 %v3575_v33 }
 0x513   :  { %1727 = vperm.xlu1 %1929, %v1233_v51  }
 0x518   :  { %v1284_v48 = vpop.permute.xlu0 %1283 }
 0x519   :  { %v1279_v13 = vpop.permute.xlu1 %1278  ;;  %v1288_v1 = vmul.f32 %v1284_v48, %v1227_v15  ;;  %v1289_v31 = vmul.f32 %v1284_v48, %v3048_v56 }
 0x51a   :  { %v1286_v27 = vmul.f32 %v1279_v13, %v1221_v5  ;;  %v1287_v23 = vmul.f32 %v1279_v13, %v1223_v34 }
 0x589   :  { %v1293_v60 = vpop.permute.xlu1 %1292 }
 0x58a   :  { %v3064_v49 = vadd.f32 %v1293_v60, %v1286_v27  ;;  %v3066_v41 = vadd.f32 %v1293_v60, %v1287_v23 }
 0x58c   :  { %v1307_v40 = vand.u32 2139095040, %v3064_v49  ;;  %v1411_v47 = vand.u32 2139095040, %v3066_v41  ;;  %v1304_v34 = vand.u32 2147483647, %v3064_v49  ;;  %v1408_v12 = vand.u32 2147483647, %v3066_v41 }
 0x58d   :  { %v1298_v26 = vpop.permute.xlu1 %1297 }
 0x58e   :  { %v1308_v52 = vshrl.u32 %v1307_v40, 23  ;;  %v1412_v42 = vshrl.u32 %v1411_v47, 23  ;;  %v3070_v57 = vadd.f32 %v1298_v26, %v1288_v1  ;;  %v3074_v21 = vadd.f32 %v1298_v26, %v1289_v31 }
 0x58f   :  { %v1311_v59 = vand.u32 8388607, %v1304_v34  ;;  %v1415_v16 = vand.u32 8388607, %v1408_v12 }
 0x590   :  { %v1823_v36 = vadd.s32 4294967169, %v1308_v52  ;;  %v1827_v61 = vadd.s32 4294967169, %v1412_v42  ;;  %v1515_v44 = vand.u32 2139095040, %v3070_v57  ;;  %v1619_v56 = vand.u32 2139095040, %v3074_v21 }
 0x591   :  { %v1512_v29 = vand.u32 2147483647, %v3070_v57  ;;  %v1312_v10 = vor.u32 8388608, %v1311_v59  ;;  %v1416_v45 = vor.u32 8388608, %v1415_v16 }
 0x592   :  { %v1314_v32 = vadd.s32 1, %v1823_v36  ;;  %v1418_v5 = vadd.s32 1, %v1827_v61  ;;  %v1516_v15 = vshrl.u32 %v1515_v44, 23  ;;  %v1620_v17 = vshrl.u32 %v1619_v56, 23 }
 0x593   :  { %v3103_v2 = vand.u32 8388607, %v1512_v29  ;;  %v3109_v37 = vshll.u32 %v1312_v10, 8  ;;  %v3116_v27 = vshll.u32 %v1416_v45, 8 }
 0x594   :  { %vm1315_vm10 = vcmp.gt.s32.totalorder %v1314_v32, 0  ;;  %vm1419_vm12 = vcmp.gt.s32.totalorder %v1418_v5, 0  ;;  %v1831_v46 = vadd.s32 4294967169, %v1516_v15  ;;  %v1835_v43 = vadd.s32 4294967169, %v1620_v17 }
 0x595   :  { %v1316_v54 = vsel %vm1315_vm10, %v1314_v32, 0  ;;  %v1420_v62 = vsel %vm1419_vm12, %v1418_v5, 0  ;;  %v1520_v48 = vor.u32 8388608, %v3103_v2 }
 0x596   :  { %v1318_v24 = vand.u32 31, %v1316_v54  ;;  %v3079_v63 = vand.u32 31, %v1420_v62  ;;  %v1522_v11 = vadd.s32 1, %v1831_v46  ;;  %v1317_v7 = vshrl.u32 %v1316_v54, 5 }
 0x597   :  { %v3099_v22 = vshrl.u32 %v1420_v62, 5  ;;  %v3119_v23 = vadd.s32 1, %v1835_v43 }
 0x598   :  { %v1319_v0 = vsub.s32 32, %v1318_v24  ;;  %v3086_v30 = vsub.s32 32, %v3079_v63  ;;  %vm1523_vm14 = vcmp.gt.s32.totalorder %v1522_v11, 0  ;;  %v1330_v18 = vshll.u32 %v3530_v35, %v1318_v24 }
 0x599   :  { %v1524_v6 = vsel %vm1523_vm14, %v1522_v11, 0  ;;  %v1333_v20 = vshll.u32 %v3577_v38, %v1318_v24  ;;  %v1434_v25 = vshll.u32 %v3530_v35, %v3079_v63  ;;  %v1437_v55 = vshll.u32 %v3577_v38, %v3079_v63 }
 0x59a   :  { %v1331_v28 = vshrl.u32 %v3577_v38, %v1319_v0  ;;  %v1334_v53 = vshrl.u32 %v3578_v19, %v1319_v0  ;;  %v1435_v58 = vshrl.u32 %v3577_v38, %v3086_v30  ;;  %v1438_v51 = vshrl.u32 %v3578_v19, %v3086_v30 }
 0x59b   :  { %v3097_v14 = vand.u32 31, %v1524_v6  ;;  %vm1339_vm15 = vcmp.lt.s32.totalorder %v1317_v7, 4  ;;  %vm1443_vm0 = vcmp.lt.s32.totalorder %v3099_v22, 4  ;;  %v3124_v40 = vshrl.u32 %v1524_v6, 5 }
 0x59c   :  { %v1332_v3 = vor.u32 %v1331_v28, %v1330_v18  ;;  %v1335_v33 = vor.u32 %v1334_v53, %v1333_v20  ;;  %v3111_v4 = vor.u32 %v1435_v58, %v1434_v25  ;;  %v1439_v39 = vor.u32 %v1438_v51, %v1437_v55 }
 0x59d   :  { %v3114_v13 = vsub.s32 32, %v3097_v14  ;;  %v1538_v47 = vshll.u32 %v3530_v35, %v3097_v14  ;;  %v1321_v26 = vshll.u32 %v3531_v50, %v1318_v24  ;;  %v1322_v52 = vshrl.u32 %v3527_v8, %v1319_v0 }
 0x59e   :  { %v1345_v60 = vsel %vm1339_vm15, %v1332_v3, 920167782  ;;  %v1349_v1 = vsel %vm1339_vm15, %v1335_v33, 1326507024  ;;  %v1324_v42 = vshll.u32 %v3527_v8, %v1318_v24  ;;  %v1325_v31 = vshrl.u32 %v3528_v9, %v1319_v0 }
 0x59f   :  { %v1449_v36 = vsel %vm1443_vm0, %v3111_v4, 920167782  ;;  %v1453_v61 = vsel %vm1443_vm0, %v1439_v39, 1326507024  ;;  %v1539_v44 = vshrl.u32 %v3577_v38, %v3114_v13  ;;  %v3141_v32 = vshll.u32 %v3577_v38, %v3097_v14 }
 0x5a0   :  { %v1323_v5 = vor.u32 %v1322_v52, %v1321_v26  ;;  %v1326_v15 = vor.u32 %v1325_v31, %v1324_v42  ;;  %v1327_v46 = vshll.u32 %v3528_v9, %v1318_v24  ;;  %v1328_v54 = vshrl.u32 %v3530_v35, %v1319_v0 }
 0x5a1   :  { %v3147_v62 = vshrl.u32 %v3578_v19, %v3114_v13  ;;  %v1320_v56 = vshrl.u32 %v3531_v50, %v1319_v0  ;;  %vm1336_vm11 = vcmp.lt.s32.totalorder %v1317_v7, 1  ;;  %vm1338_vm1 = vcmp.lt.s32.totalorder %v1317_v7, 3 }
 0x5a2   :  { %v1329_v11 = vor.u32 %v1328_v54, %v1327_v46  ;;  %vm1337_vm4 = vcmp.lt.s32.totalorder %v1317_v7, 2  ;;  %v1344_v59 = vsel %vm1336_vm11, %v1323_v5, %v1326_v15  ;;  %v1350_v16 = vsel %vm1338_vm1, %v1332_v3, %v1349_v1 }
 0x5a3   :  { %v1340_v17 = vsel %vm1336_vm11, %v1320_v56, %v1323_v5  ;;  %v1425_v28 = vshll.u32 %v3531_v50, %v3079_v63  ;;  %v1426_v24 = vshrl.u32 %v3527_v8, %v3086_v30  ;;  %v1428_v53 = vshll.u32 %v3527_v8, %v3079_v63 }
 0x5a4   :  { %v1341_v18 = vsel %vm1339_vm15, %v1329_v11, 2102212464  ;;  %v1346_v6 = vsel %vm1338_vm1, %v1329_v11, %v1345_v60  ;;  %v1348_v0 = vsel %vm1336_vm11, %v1326_v15, %v1329_v11  ;;  %v1429_v10 = vshrl.u32 %v3528_v9, %v3086_v30 }
 0x5a5   :  { %v1342_v45 = vsel %vm1338_vm1, %v1326_v15, %v1341_v18  ;;  %v1347_v20 = vsel %vm1337_vm4, %v1344_v59, %v1346_v6  ;;  %v1351_v58 = vsel %vm1337_vm4, %v1348_v0, %v1350_v16  ;;  %v1427_v51 = vor.u32 %v1426_v24, %v1425_v28 }
 0x5a6   :  { %v1343_v43 = vsel %vm1337_vm4, %v1340_v17, %v1342_v45  ;;  %v3160_v3 = vmul.u32.u64.low %v3109_v37, %v1351_v58  ;;  %v3161_v33 = vmul.u32.u64.high %v3109_v37, %v1351_v58, %v3160_v3  ;;  %v1430_v25 = vor.u32 %v1429_v10, %v1428_v53 }
 0x5a7   :  { %v1540_v55 = vor.u32 %v1539_v44, %v1538_v47  ;;  %v3164_v39 = vmul.u32.u64.low %v3109_v37, %v1347_v20  ;;  %v3165_v7 = vmul.u32.u64.high %v3109_v37, %v1347_v20, %v3164_v39  ;;  %v1424_v60 = vshrl.u32 %v3531_v50, %v3086_v30 }
 0x5a8   :  { %v1543_v1 = vor.u32 %v3147_v62, %v3141_v32  ;;  %v1431_v26 = vshll.u32 %v3528_v9, %v3079_v63  ;;  %v1432_v52 = vshrl.u32 %v3530_v35, %v3086_v30  ;;  %vm1440_vm5 = vcmp.lt.s32.totalorder %v3099_v22, 1 }
 0x5a9   :  { %v1359_v47 = vmul.u32 %v3109_v37, %v1343_v43  ;;  %vm1441_vm7 = vcmp.lt.s32.totalorder %v3099_v22, 2  ;;  %vm1442_vm13 = vcmp.lt.s32.totalorder %v3099_v22, 3  ;;  %v1444_v42 = vsel %vm1440_vm5, %v1424_v60, %v1427_v51 }
 0x5aa   :  { %vm1361_vm2 = vc.u32 %v3161_v33, %v3164_v39  ;;  %v1433_v31 = vor.u32 %v1432_v52, %v1431_v26  ;;  %v1448_v63 = vsel %vm1440_vm5, %v1427_v51, %v1430_v25  ;;  %v1454_v30 = vsel %vm1442_vm13, %v3111_v4, %v1453_v61 }
 0x5ab   :  { %vm1627_vm8 = vcmp.gt.s32.totalorder %v3119_v23, 0  ;;  %v1362_v37 = vadd.s32 1, %v3165_v7  ;;  %v1529_v44 = vshll.u32 %v3531_v50, %v3097_v14  ;;  %v1530_v32 = vshrl.u32 %v3527_v8, %v3114_v13 }
 0x5ac   :  { %v1532_v5 = vshll.u32 %v3527_v8, %v3097_v14  ;;  %v1445_v15 = vsel %vm1443_vm0, %v1433_v31, 2102212464  ;;  %v1450_v46 = vsel %vm1442_vm13, %v1433_v31, %v1449_v36  ;;  %v1452_v4 = vsel %vm1440_vm5, %v1430_v25, %v1433_v31 }
 0x5ad   :  { %v1533_v61 = vshrl.u32 %v3528_v9, %v3114_v13  ;;  %v1363_v54 = vsel %vm1361_vm2, %v1362_v37, %v3165_v7  ;;  %v1446_v62 = vsel %vm1442_vm13, %v1430_v25, %v1445_v15  ;;  %v1451_v56 = vsel %vm1441_vm7, %v1448_v63, %v1450_v46 }
 0x5ae   :  { %v1455_v11 = vsel %vm1441_vm7, %v1452_v4, %v1454_v30  ;;  %v1364_v59 = vadd.s32 %v1363_v54, %v1359_v47  ;;  %v1447_v36 = vsel %vm1441_vm7, %v1444_v42, %v1446_v62  ;;  %vm1547_vm3 = vcmp.lt.s32.totalorder %v3124_v40, 4 }
 0x5af   :  { %v3215_v16 = vmul.u32.u64.low %v3116_v27, %v1455_v11  ;;  %v3216_v17 = vmul.u32.u64.high %v3116_v27, %v1455_v11, %v3215_v16  ;;  %v3220_v28 = vmul.u32.u64.low %v3116_v27, %v1451_v56  ;;  %v3221_v24 = vmul.u32.u64.high %v3116_v27, %v1451_v56, %v3220_v28 }
 0x5b0   :  { %v1531_v53 = vor.u32 %v1530_v32, %v1529_v44  ;;  %v1365_v18 = vadd.s32 536870912, %v1364_v59  ;;  %v1534_v6 = vor.u32 %v1533_v61, %v1532_v5  ;;  %v1535_v0 = vshll.u32 %v3528_v9, %v3097_v14 }
 0x5b1   :  { %v1536_v22 = vshrl.u32 %v3530_v35, %v3114_v13  ;;  %v1553_v10 = vsel %vm1547_vm3, %v1540_v55, 920167782  ;;  %v1557_v45 = vsel %vm1547_vm3, %v1543_v1, 1326507024  ;;  %v1463_v20 = vmul.u32 %v3116_v27, %v1447_v36 }
 0x5b2   :  { %v1528_v58 = vshrl.u32 %v3531_v50, %v3114_v13  ;;  %v3235_v51 = vshrl.u32 %v1365_v18, 30  ;;  %vm1465_vm9 = vc.u32 %v3216_v17, %v3220_v28  ;;  %vm1544_vm6 = vcmp.lt.s32.totalorder %v3124_v40, 1 }
 0x5b3   :  { %v1537_v14 = vor.u32 %v1536_v22, %v1535_v0  ;;  %v1466_v43 = vadd.s32 1, %v3221_v24  ;;  %vm1545_vm10 = vcmp.lt.s32.totalorder %v3124_v40, 2  ;;  %vm1546_vm12 = vcmp.lt.s32.totalorder %v3124_v40, 3 }
 0x5b4   :  { %v1552_v27 = vsel %vm1544_vm6, %v1531_v53, %v1534_v6  ;;  %v1367_v3 = vshll.u32 %v3235_v51, 30  ;;  %v1558_v7 = vsel %vm1546_vm12, %v1540_v55, %v1557_v45  ;;  %v1560_v52 = vshll.u32 %v1520_v48, 8 }
 0x5b5   :  { %v1549_v13 = vsel %vm1547_vm3, %v1537_v14, 2102212464  ;;  %v1554_v25 = vsel %vm1546_vm12, %v1537_v14, %v1553_v10  ;;  %v1467_v60 = vsel %vm1465_vm9, %v1466_v43, %v3221_v24  ;;  %v1556_v26 = vsel %vm1544_vm6, %v1534_v6, %v1537_v14 }
 0x5b6   :  { %v1555_v1 = vsel %vm1545_vm10, %v1552_v27, %v1554_v25  ;;  %v1628_v47 = vsel %vm1627_vm8, %v3119_v23, 0  ;;  %v3258_v42 = vsub.s32 %v1364_v59, %v1367_v3  ;;  %v1468_v31 = vadd.s32 %v1467_v60, %v1463_v20 }
 0x5b7   :  { %v1548_v55 = vsel %vm1544_vm6, %v1528_v58, %v1531_v53  ;;  %v1550_v63 = vsel %vm1546_vm12, %v1534_v6, %v1549_v13  ;;  %v1559_v30 = vsel %vm1545_vm10, %v1556_v26, %v1558_v7  ;;  %v1630_v23 = vand.u32 31, %v1628_v47 }
 0x5b8   :  { %v3264_v37 = vmul.u32.u64.low %v1560_v52, %v1555_v1  ;;  %v3265_v44 = vmul.u32.u64.high %v1560_v52, %v1555_v1, %v3264_v37  ;;  %v1370_v2 = vsub.s32 0, %v3258_v42  ;;  %v1469_v48 = vadd.s32 536870912, %v1468_v31 }
 0x5b9   :  { %v3269_v32 = vmul.u32.u64.low %v1560_v52, %v1559_v30  ;;  %v3270_v5 = vmul.u32.u64.high %v1560_v52, %v1559_v30, %v3269_v32  ;;  %v1551_v4 = vsel %vm1545_vm10, %v1548_v55, %v1550_v63  ;;  %v1631_v11 = vsub.s32 32, %v1630_v23 }
 0x5ba   :  { %v1824_v15 = vmin.u32 %v1370_v2, %v3258_v42  ;;  %v3273_v46 = vshrl.u32 %v1469_v48, 30  ;;  %v1570_v61 = vadd.s32 1, %v3265_v44  ;;  %v1567_v56 = vmul.u32 %v1560_v52, %v1551_v4 }
 0x5bb   :  { %vm1569_vm14 = vc.u32 %v3270_v5, %v3264_v37  ;;  %v1643_v6 = vshrl.u32 %v3577_v38, %v1631_v11  ;;  %v1642_v45 = vshll.u32 %v3530_v35, %v1630_v23  ;;  %v1646_v20 = vshrl.u32 %v3578_v19, %v1631_v11 }
 0x5bc   :  { %v1372_v54 = vclz %v1824_v15  ;;  %v1471_v62 = vshll.u32 %v3273_v46, 30  ;;  %v1571_v36 = vsel %vm1569_vm14, %v1570_v61, %v3265_v44  ;;  %v1616_v58 = vand.u32 2147483647, %v3074_v21 }
 0x5bd   :  { %v1572_v24 = vadd.s32 %v1571_v36, %v1567_v56  ;;  %v3292_v14 = vshrl.u32 %v1628_v47, 5  ;;  %v1637_v43 = vshrl.u32 %v3528_v9, %v1631_v11  ;;  %v1640_v27 = vshrl.u32 %v3530_v35, %v1631_v11 }
 0x5be   :  { %v1825_v59 = vadd.s32 4294967294, %v1372_v54  ;;  %v3282_v16 = vsub.s32 %v1468_v31, %v1471_v62  ;;  %v1644_v3 = vor.u32 %v1643_v6, %v1642_v45  ;;  %v1645_v13 = vshll.u32 %v3577_v38, %v1630_v23 }
 0x5bf   :  { %v1573_v18 = vadd.s32 536870912, %v1572_v24  ;;  %v1634_v1 = vshrl.u32 %v3527_v8, %v1631_v11  ;;  %v1636_v26 = vshll.u32 %v3527_v8, %v1630_v23  ;;  %v1639_v19 = vshll.u32 %v3528_v9, %v1630_v23 }
 0x5c0   :  { %vm1826_vm15 = vcmp.lt.s32.totalorder %v1825_v59, 0  ;;  %v1474_v40 = vsub.s32 0, %v3282_v16  ;;  %v1647_v52 = vor.u32 %v1646_v20, %v1645_v13  ;;  %v1623_v31 = vand.u32 8388607, %v1616_v58 }
 0x5c1   :  { %v1375_v53 = vsel %vm1826_vm15, 0, %v1825_v59  ;;  %v3287_v10 = vshrl.u32 %v1573_v18, 30  ;;  %v1633_v35 = vshll.u32 %v3531_v50, %v1630_v23  ;;  %v1638_v63 = vor.u32 %v1637_v43, %v1636_v26 }
 0x5c2   :  { %v1380_v0 = vsub.s32 4294967266, %v1375_v53  ;;  %v1828_v22 = vmin.u32 %v1474_v40, %v3282_v16  ;;  %v1376_v55 = vsub.s32 32, %v1375_v53  ;;  %v1641_v38 = vor.u32 %v1640_v27, %v1639_v19 }
 0x5c3   :  { %v1575_v7 = vshll.u32 %v3287_v10, 30  ;;  %vm1651_vm0 = vcmp.lt.s32.totalorder %v3292_v14, 4  ;;  %v1360_v8 = vadd.s32 %v3164_v39, %v3161_v33  ;;  %v1635_v48 = vor.u32 %v1634_v1, %v1633_v35 }
 0x5c4   :  { %v1476_v25 = vclz %v1828_v22  ;;  %v1381_v60 = vadd.s32 127, %v1380_v0  ;;  %v1657_v2 = vsel %vm1651_vm0, %v1644_v3, 920167782  ;;  %v1661_v32 = vsel %vm1651_vm0, %v1647_v52, 1326507024 }
 0x5c5   :  { %v1576_v47 = vsub.s32 %v1572_v24, %v1575_v7  ;;  %v1624_v4 = vor.u32 8388608, %v1623_v31  ;;  %vm1648_vm11 = vcmp.lt.s32.totalorder %v3292_v14, 1  ;;  %v1377_v23 = vshll.u32 %v3258_v42, %v1375_v53 }
 0x5c6   :  { %v1829_v30 = vadd.s32 4294967294, %v1476_v25  ;;  %v1382_v9 = vshll.u32 %v1381_v60, 23  ;;  %v1378_v61 = vshrl.u32 %v1360_v8, %v1376_v55  ;;  %v1660_v54 = vsel %vm1648_vm11, %v1638_v63, %v1641_v38 }
 0x5c7   :  { %v1578_v44 = vsub.s32 0, %v1576_v47  ;;  %vm1649_vm4 = vcmp.lt.s32.totalorder %v3292_v14, 2  ;;  %vm1650_vm5 = vcmp.lt.s32.totalorder %v3292_v14, 3  ;;  %v1656_v39 = vsel %vm1648_vm11, %v1635_v48, %v1638_v63 }
 0x5c8   :  { %vm1830_vm1 = vcmp.lt.s32.totalorder %v1829_v30, 0  ;;  %v1383_v33 = vor.u32 4788187, %v1382_v9  ;;  %v1658_v56 = vsel %vm1650_vm5, %v1641_v38, %v1657_v2  ;;  %v1662_v42 = vsel %vm1650_vm5, %v1644_v3, %v1661_v32 }
 0x5c9   :  { %v1832_v15 = vmin.u32 %v1578_v44, %v1576_v47  ;;  %v1663_v36 = vsel %vm1649_vm4, %v1660_v54, %v1662_v42  ;;  %v1664_v24 = vshll.u32 %v1624_v4, 8  ;;  %v1379_v53 = vor.u32 %v1378_v61, %v1377_v23 }
 0x5ca   :  { %v1479_v40 = vsel %vm1830_vm1, 0, %v1829_v30  ;;  %v1632_v18 = vshrl.u32 %v3531_v50, %v1631_v11  ;;  %v1653_v6 = vsel %vm1651_vm0, %v1641_v38, 2102212464  ;;  %v1659_v0 = vsel %vm1649_vm4, %v1656_v39, %v1658_v56 }
 0x5cb   :  { %v1580_v62 = vclz %v1832_v15  ;;  %v3330_v22 = vmul.u32.u64.low %v1664_v24, %v1663_v36  ;;  %v3331_v45 = vmul.u32.u64.high %v1664_v24, %v1663_v36, %v3330_v22  ;;  %v1384_v20 = vand.u32 2147483647, %v1383_v33 }
 0x5cc   :  { %v1568_v43 = vadd.s32 %v3264_v37, %v3270_v5  ;;  %v1652_v3 = vsel %vm1648_vm11, %v1632_v18, %v1635_v48  ;;  %v1484_v13 = vsub.s32 4294967266, %v1479_v40  ;;  %v1654_v25 = vsel %vm1650_vm5, %v1638_v63, %v1653_v6 }
 0x5cd   :  { %v1833_v59 = vadd.s32 4294967294, %v1580_v62  ;;  %v1386_v7 = vcvt.s32.f32 %v1379_v53  ;;  %v3339_v60 = vmul.u32.u64.low %v1664_v24, %v1659_v0  ;;  %v3340_v1 = vmul.u32.u64.high %v1664_v24, %v1659_v0, %v3339_v60 }
 0x5ce   :  { %v1655_v37 = vsel %vm1649_vm4, %v1652_v3, %v1654_v25  ;;  %v1485_v5 = vadd.s32 127, %v1484_v13  ;;  %v1480_v38 = vsub.s32 32, %v1479_v40  ;;  %vm1306_vm2 = vcmp.lt.s32.totalorder %v3064_v49, 0 }
 0x5cf   :  { %vm1834_vm7 = vcmp.lt.s32.totalorder %v1833_v59, 0  ;;  %v1387_v31 = vmul.f32 %v1386_v7, %v1384_v20  ;;  %vm1673_vm13 = vc.u32 %v3331_v45, %v3339_v60  ;;  %v1674_v63 = vadd.s32 1, %v3340_v1 }
 0x5d0   :  { %v1583_v27 = vsel %vm1834_vm7, 0, %v1833_v59  ;;  %v1671_v44 = vmul.u32 %v1664_v24, %v1655_v37  ;;  %v1486_v9 = vshll.u32 %v1485_v5, 23  ;;  %v1481_v61 = vshll.u32 %v3282_v16, %v1479_v40 }
 0x5d1   :  { %v1584_v50 = vsub.s32 32, %v1583_v27  ;;  %v1588_v11 = vsub.s32 4294967266, %v1583_v27  ;;  %v1585_v26 = vshll.u32 %v1576_v47, %v1583_v27  ;;  %v1388_v2 = vxor.u32 2147483648, %v1387_v31 }
 0x5d2   :  { %v1464_v47 = vadd.s32 %v3220_v28, %v3216_v17  ;;  %v1675_v8 = vsel %vm1673_vm13, %v1674_v63, %v3340_v1  ;;  %v1487_v62 = vor.u32 4788187, %v1486_v9  ;;  %vm3359_vm8 = vcmp.le.f32.partialorder %v1304_v34, 0.7853982 }
 0x5d3   :  { %v1586_v19 = vshrl.u32 %v1568_v43, %v1584_v50  ;;  %v1589_v52 = vadd.s32 127, %v1588_v11  ;;  %v1676_v32 = vadd.s32 %v1675_v8, %v1671_v44  ;;  %v1389_v54 = vsel %vm1306_vm2, %v1388_v2, %v1387_v31 }
 0x5d4   :  { %v1482_v15 = vshrl.u32 %v1464_v47, %v1480_v38  ;;  %vm1514_vm3 = vcmp.lt.s32.totalorder %v3070_v57, 0  ;;  %vm3366_vm9 = vcmp.le.f32.partialorder %v1512_v29, 0.7853982  ;;  %v1392_v34 = vsel %vm3359_vm8, %v3064_v49, %v1389_v54 }
 0x5d5   :  { %v1587_v55 = vor.u32 %v1586_v19, %v1585_v26  ;;  %v1590_v35 = vshll.u32 %v1589_v52, 23  ;;  %v1677_v23 = vadd.s32 536870912, %v1676_v32  ;;  %v1598_v59 = vsub.s32 4, %v3287_v10 }
 0x5d6   :  { %v1483_v28 = vor.u32 %v1482_v15, %v1481_v61  ;;  %v1488_v24 = vand.u32 2147483647, %v1487_v62  ;;  %v1390_v53 = vsub.s32 4, %v3235_v51  ;;  %vm1410_vm10 = vcmp.lt.s32.totalorder %v3066_v41, 0 }
 0x5d7   :  { %v1591_v30 = vor.u32 4788187, %v1590_v35  ;;  %v1594_v48 = vcvt.s32.f32 %v1587_v55  ;;  %v3355_v39 = vshrl.u32 %v1677_v23, 30  ;;  %v1599_v6 = vsel %vm1514_vm3, %v1598_v59, %v3287_v10  ;;  %v1723_v59 = vpop.permute.xlu0 %1722 }
 0x5d8   :  { %v1490_v40 = vcvt.s32.f32 %v1483_v28  ;;  %v1391_v20 = vsel %vm1306_vm2, %v1390_v53, %v3235_v51  ;;  %v1601_v43 = vsel %vm3366_vm9, 0, %v1599_v6  ;;  %v1672_v19 = vadd.s32 %v3339_v60, %v3331_v45 }
 0x5d9   :  { %v1592_v14 = vand.u32 2147483647, %v1591_v30  ;;  %v1679_v42 = vshll.u32 %v3355_v39, 30  ;;  %v1393_v3 = vsel %vm3359_vm8, 0, %v1391_v20  ;;  %v1605_v11 = vadd.s32 3, %v1601_v43 }
 0x5da   :  { %v1491_v0 = vmul.f32 %v1490_v40, %v1488_v24  ;;  %v1397_v10 = vadd.s32 3, %v1393_v3  ;;  %vm3398_vm12 = vcmp.le.f32.partialorder %v1408_v12, 0.7853982  ;;  %v1494_v12 = vsub.s32 4, %v3273_v46 }
 0x5db   :  { %v1595_v4 = vmul.f32 %v1594_v48, %v1592_v14  ;;  %v1680_v29 = vsub.s32 %v1676_v32, %v1679_v42  ;;  %v1606_v55 = vand.u32 3, %v1605_v11  ;;  %v1702_v17 = vsub.s32 4, %v3355_v39 }
 0x5dc   :  { %v1492_v13 = vxor.u32 2147483648, %v1491_v0  ;;  %v1398_v2 = vand.u32 3, %v1397_v10  ;;  %v1495_v54 = vsel %vm1410_vm10, %v1494_v12, %v3273_v46  ;;  %vm1604_vm5 = vweird.f32 %v3070_v57 }
 0x5dd   :  { %v1596_v33 = vxor.u32 2147483648, %v1595_v4  ;;  %v1682_v18 = vsub.s32 0, %v1680_v29  ;;  %vm1608_vm14 = vcmp.eq.s32.totalorder %v1606_v55, 0  ;;  %vm1611_vm15 = vcmp.eq.s32.totalorder %v1606_v55, 2 }
 0x5de   :  { %v1493_v51 = vsel %vm1410_vm10, %v1492_v13, %v1491_v0  ;;  %vm1400_vm0 = vcmp.eq.s32.totalorder %v1398_v2, 0  ;;  %vm1403_vm11 = vcmp.eq.s32.totalorder %v1398_v2, 2  ;;  %vm1607_vm1 = vcmp.lt.s32.totalorder %v1606_v55, 2 }
 0x5df   :  { %v1597_v56 = vsel %vm1514_vm3, %v1596_v33, %v1595_v4  ;;  %v1836_v22 = vmin.u32 %v1682_v18, %v1680_v29  ;;  %v1496_v45 = vsel %vm3398_vm12, %v3066_v41, %v1493_v51  ;;  %vm1399_vm4 = vcmp.lt.s32.totalorder %v1398_v2, 2 }
 0x5e0   :  { %v1600_v36 = vsel %vm3366_vm9, %v3070_v57, %v1597_v56  ;;  %v1497_v16 = vsel %vm3398_vm12, 0, %v1495_v54  ;;  %vm1396_vm7 = vweird.f32 %v3064_v49  ;;  %vm1618_vm13 = vcmp.lt.s32.totalorder %v3074_v21, 0 }
 0x5e1   :  { %1974 = vcosq.f32 %v1600_v36  ;;  %v1684_v27 = vclz %v1836_v22  ;;  %vm3417_vm2 = vcmp.le.f32.partialorder %v1616_v58, 0.7853982  ;;  %v1703_v57 = vsel %vm1618_vm13, %v1702_v17, %v3355_v39 }
 0x5e2   :  { %1976 = vsinq.f32 %v1600_v36  ;;  %v1705_v0 = vsel %vm3417_vm2, 0, %v1703_v57  ;;  %vm1500_vm10 = vweird.f32 %v3066_v41  ;;  %v3588_v54 = vlaneseq }
 0x5e3   :  { %1978 = vcosq.f32 %v1392_v34  ;;  %v1837_v50 = vadd.s32 4294967294, %v1684_v27  ;;  %v1709_v27 = vadd.s32 3, %v1705_v0 }
 0x5e4   :  { %1980 = vsinq.f32 %v1392_v34  ;;  %v1728_v34 = vpop.permute.xlu1 %1727 }
 0x5e5   :  { %vm1838_vm6 = vcmp.lt.s32.totalorder %v1837_v50, 0  ;;  %1982 = vcosq.f32 %v1496_v45 }
 0x5e6   :  { %v1687_v1 = vsel %vm1838_vm6, 0, %v1837_v50  ;;  %1984 = vsinq.f32 %v1496_v45  ;;  %v1710_v50 = vand.u32 3, %v1709_v27 }
 0x5e7   :  { %v1688_v52 = vsub.s32 32, %v1687_v1  ;;  %v1692_v31 = vsub.s32 4294967266, %v1687_v1  ;;  %v1689_v38 = vshll.u32 %v1680_v29, %v1687_v1  ;;  %v1501_v29 = vadd.s32 3, %v1497_v16 }
 0x5e8   :  { %vm1715_vm6 = vcmp.eq.s32.totalorder %v1710_v50, 2  ;;  %vm1712_vm12 = vcmp.eq.s32.totalorder %v1710_v50, 0 }
 0x5e9   :  { %v1690_v30 = vshrl.u32 %v1672_v19, %v1688_v52  ;;  %v1693_v44 = vadd.s32 127, %v1692_v31  ;;  %v1502_v58 = vand.u32 3, %v1501_v29 }
 0x5eb   :  { %v1975_v25 = vpop.eup %1974  ;;  %v1691_v8 = vor.u32 %v1690_v30, %v1689_v38  ;;  %v1694_v9 = vshll.u32 %v1693_v44, 23  ;;  %vm1504_vm8 = vcmp.eq.s32.totalorder %v1502_v58, 0  ;;  %vm1507_vm3 = vcmp.eq.s32.totalorder %v1502_v58, 2 }
 0x5ec   :  { %v1977_v7 = vpop.eup %1976  ;;  %v1612_v35 = vxor.u32 2147483648, %v1975_v25  ;;  %vm1503_vm9 = vcmp.lt.s32.totalorder %v1502_v58, 2 }
 0x5ed   :  { %v1979_v26 = vpop.eup %1978  ;;  %v1609_v63 = vxor.u32 2147483648, %v1977_v7  ;;  %v1695_v32 = vor.u32 4788187, %v1694_v9  ;;  %v1698_v61 = vcvt.s32.f32 %v1691_v8  ;;  %v1749_v9 = vstv %s3450_s4 }
 0x5ee   :  { %v1981_v37 = vpop.eup %1980  ;;  %v1404_v47 = vxor.u32 2147483648, %v1979_v26  ;;  %v1613_v48 = vsel %vm1611_vm15, %v1612_v35, %v1977_v7  ;;  %vm1708_vm15 = vweird.f32 %v3074_v21 }
 0x5ef   :  { %v1401_v60 = vxor.u32 2147483648, %v1981_v37  ;;  %v1610_v14 = vsel %vm1608_vm14, %v1975_v25, %v1609_v63  ;;  %v1696_v23 = vand.u32 2147483647, %v1695_v32  ;;  %v1983_v49 = vpop.eup %1982  ;;  %vm1711_vm14 = vcmp.lt.s32.totalorder %v1710_v50, 2 }
 0x5f0   :  { %v1405_v4 = vsel %vm1403_vm11, %v1404_v47, %v1981_v37  ;;  %v1614_v62 = vsel %vm1607_vm1, %v1610_v14, %v1613_v48  ;;  %v1985_v18 = vpop.eup %1984  ;;  %v1508_v43 = vxor.u32 2147483648, %v1983_v49 }
 0x5f1   :  { %v1402_v15 = vsel %vm1400_vm0, %v1979_v26, %v1401_v60  ;;  %v1699_v33 = vmul.f32 %v1698_v61, %v1696_v23  ;;  %v1615_v56 = vsel %vm1604_vm5, nan, %v1614_v62  ;;  %v1505_v20 = vxor.u32 2147483648, %v1985_v18 }
 0x5f2   :  { %v1406_v28 = vsel %vm1399_vm4, %v1402_v15, %v1405_v4  ;;  %v1732_v40 = vmul.f32 %v1728_v34, %v1615_v56  ;;  %v1509_v13 = vsel %vm1507_vm3, %v1508_v43, %v1985_v18  ;;  %v2027_v60 = vmov 1966171168   ;;  %v3587_v15 = vld [vmem:[#allocation6_spill] sm:$0xff] }
 0x5f3   :  { %v1700_v42 = vxor.u32 2147483648, %v1699_v33  ;;  %v1407_v46 = vsel %vm1396_vm7, nan, %v1406_v28  ;;  %v1506_v3 = vsel %vm1504_vm8, %v1983_v49, %v1505_v20  ;;  %v1756_v41 = vunpack.c.l.s4 %v2027_v60 }
 0x5f4   :  { %v1730_v6 = vmul.f32 %v1723_v59, %v1407_v46  ;;  %v1510_v7 = vsel %vm1503_vm9, %v1506_v3, %v1509_v13  ;;  %vm1772_vm0 = vcmp.lt.s32.totalorder %v3588_v54, 256 }
 0x5f5   :  { %v1701_v24 = vsel %vm1618_vm13, %v1700_v42, %v1699_v33  ;;  %v1511_v19 = vsel %vm1500_vm10, nan, %v1510_v7  ;;  %v1757_v12 = vunpack.c.0.s8 %v1756_v41 }
 0x5f6   :  { %v1704_v53 = vsel %vm3417_vm2, %v3074_v21, %v1701_v24  ;;  %v1734_v22 = vadd.f32 %v1732_v40, %v1730_v6  ;;  %v1731_v55 = vmul.f32 %v1723_v59, %v1511_v19 }
 0x5f7   :  { %1986 = vcosq.f32 %v1704_v53  ;;  %v1760_v4 = vsub.s32 %v1757_v12, %v3587_v15 }
 0x5f8   :  { %1988 = vsinq.f32 %v1704_v53  ;;  %v1735_v39 = vrot.slane %v1734_v22, 4 }
 0x5fa   :  { %v1736_v1 = vadd.f32 %v1735_v39, %v1734_v22 }
 0x5fc   :  { %v1737_v37 = vrot.slane %v1736_v1, 2 }
 0x5fe   :  { %v1738_v63 = vadd.f32 %v1737_v37, %v1736_v1 }
 0x600   :  { %v1739_v44 = vrot.slane %v1738_v63, 1 }
 0x601   :  { %v1987_v11 = vpop.eup %1986 }
 0x602   :  { %v1989_v25 = vpop.eup %1988  ;;  %v1716_v10 = vxor.u32 2147483648, %v1987_v11  ;;  %v1740_v47 = vadd.f32 %v1739_v44, %v1738_v63 }
 0x603   :  { %v1713_v26 = vxor.u32 2147483648, %v1989_v25 }
 0x604   :  { %v1717_v51 = vsel %vm1715_vm6, %v1716_v10, %v1989_v25  ;;  %v1750_v48 = vadd.f32 %v1749_v9, %v1740_v47 }
 0x605   :  { %v1714_v52 = vsel %vm1712_vm12, %v1987_v11, %v1713_v26 }
 0x606   :  { %v1718_v31 = vsel %vm1711_vm14, %v1714_v52, %v1717_v51 }
 0x607   :  { %v1719_v5 = vsel %vm1708_vm15, nan, %v1718_v31 }
 0x608   :  { %v1733_v35 = vmul.f32 %v1728_v34, %v1719_v5 }
 0x60a   :  { %v1741_v38 = vadd.f32 %v1733_v35, %v1731_v55 }
 0x60c   :  { %v1742_v30 = vrot.slane %v1741_v38, 4 }
 0x60e   :  { %v1743_v2 = vadd.f32 %v1742_v30, %v1741_v38 }
 0x610   :  { %v1744_v45 = vrot.slane %v1743_v2, 2 }
 0x612   :  { %v1745_v8 = vadd.f32 %v1744_v45, %v1743_v2 }
 0x614   :  { %v1746_v21 = vrot.slane %v1745_v8, 1 }
 0x616   :  { %v1747_v14 = vadd.f32 %v1746_v21, %v1745_v8 }
 0x618   :  { %v1751_v32 = vadd.f32 %v1749_v9, %v1747_v14 }
 0x61a   :  { %v1754_v23 = vcombine.low %v1750_v48, %v1751_v32 }
 0x61c   :  { %v1761_v61 = vrot.slane %v1754_v23, %v1760_v4 }
 0x61e   :  { %v1768_v62 = vrot.slane %v1761_v61, %v1760_v4 }
 0x620   :  { %1774 = vst.msk [vmem:[#allocation3] sm:$0x3] %vm1772_vm0, %v1768_v62 }
 0x621   :  { %2001 = shalt.err (!%p1998_p4)
}
 0x622   :  { %s2002_s14 = scalar_lea.hbm %s3451_s5, 32 }
 0x623   :  { %p2003_p5 = scmp.ne.s32.totalorder %s3451_s5, %s2002_s14  ;;  %p2006_p6 = scmp.lt.u32.totalorder %s2002_s14, %s3451_s5 }
 0x625   :  { %p2008_p7 = pnand %p2006_p6, %p2003_p5 }
 0x627   :  { %2011 = shalt.err (!%p2008_p7)
}
 0x628   :  { %1784 = dma.vmem_to_hbm [thread:$0]  %s1782_s11, 32, %s3451_s5, [#allocation4]  }
 0x629   :  { %2012 = dma.done.wait [#allocation4], 32  }
 0x62a   :  { %2013 = vsyncadd [#allocation4], 4294967264 }
 0x62b   :  { %1788 = vsyncpa [#allocation4], 1 }

</bundles_post_ra>
